<compile_context>
chip_gen: v7x
topology: tpu7x:2x2x1
jax: 0.10.0
libtpu: 0.0.40
codegen_flags: <defaults>
</compile_context>

<pallas_src>
import functools

import jax
import jax.numpy as jnp
from jax import lax
from jax.experimental import pallas as pl
from jax.experimental.pallas import tpu as pltpu

_LANE = 128
_FUSE_XW_VMEM_BYTES = 8 * 1024 * 1024  # persistent XW scratch budget (v7x-safe)


# ---------------------------------------------------------------------------
# Small helpers
# ---------------------------------------------------------------------------
def _round_up(v, m):
    return ((v + m - 1) // m) * m


def _pad2d(x, rows, cols):
    r, c = x.shape
    return jnp.pad(x, ((0, rows - r), (0, cols - c)))


def _pick_tile(n, prefs):
    for t in prefs:
        if n >= t and n % t == 0:
            return t
    return _LANE


def _vmem_limit(est_bytes):
    # At least the 32 MiB scoped default, capped at 64 MiB so the value stays
    # legal on v7x (64 MiB physical VMEM per TensorCore).
    return int(min(max(est_bytes * 5 // 4, 32 * 1024 * 1024), 64 * 1024 * 1024))


# ---------------------------------------------------------------------------
# Fused kernel: out = relu(d_dst * (A @ ((d_src * X) @ W)) + b) in ONE pass
# ---------------------------------------------------------------------------
def _make_fused_gcn_kernel(tk):
    """grid = (dst_tiles, k_tiles).  The XW k-stripe is computed only on the
    first dst tile (i == 0) into the persistent VMEM scratch xw_ref and reused
    for all later dst tiles, so the dst axis must stay sequential."""

    def kernel(dsrc_ref, x_ref, w_ref, b_ref, a_ref, o_ref,
               xw_ref, acc_ref, deg_ref):
        i = pl.program_id(0)
        k = pl.program_id(1)
        ks = pl.multiple_of(k * tk, tk)

        @pl.when(i == 0)
        def _():
            # Feature transform for this stripe of source nodes (computed once).
            xd = (x_ref[...].astype(jnp.float32) * dsrc_ref[...]).astype(jnp.bfloat16)
            xw = jnp.dot(xd, w_ref[...], preferred_element_type=jnp.float32)
            xw_ref[pl.ds(ks, tk), :] = xw.astype(jnp.bfloat16)

        @pl.when(k == 0)
        def _():
            acc_ref[...] = jnp.zeros_like(acc_ref)
            deg_ref[...] = jnp.zeros_like(deg_ref)

        a = a_ref[...]
        # Fuse d_dst (row degree) into the reduction: A is read exactly once.
        deg_ref[...] += jnp.sum(a.astype(jnp.float32), axis=1, keepdims=True)
        acc_ref[...] += jnp.dot(a, xw_ref[pl.ds(ks, tk), :],
                                preferred_element_type=jnp.float32)

        @pl.when(k == pl.num_programs(1) - 1)
        def _():
            d_dst = lax.rsqrt(jnp.maximum(deg_ref[...], 1.0))
            out = acc_ref[...] * d_dst + b_ref[...]          # f32 epilogue
            o_ref[...] = jnp.maximum(out, 0.0).astype(o_ref.dtype)

    return kernel


# ---------------------------------------------------------------------------
# Split-path kernels (fallback when XW does not fit in VMEM)
# ---------------------------------------------------------------------------
def _xw_kernel(dsrc_ref, x_ref, w_ref, o_ref):
    xd = (x_ref[...].astype(jnp.float32) * dsrc_ref[...]).astype(jnp.bfloat16)
    o_ref[...] = jnp.dot(xd, w_ref[...],
                         preferred_element_type=jnp.float32).astype(o_ref.dtype)


def _agg_kernel(a_ref, xw_ref, b_ref, o_ref, acc_ref, deg_ref):
    k = pl.program_id(1)

    @pl.when(k == 0)
    def _():
        acc_ref[...] = jnp.zeros_like(acc_ref)
        deg_ref[...] = jnp.zeros_like(deg_ref)

    a = a_ref[...]
    deg_ref[...] += jnp.sum(a.astype(jnp.float32), axis=1, keepdims=True)
    acc_ref[...] += jnp.dot(a, xw_ref[...], preferred_element_type=jnp.float32)

    @pl.when(k == pl.num_programs(1) - 1)
    def _():
        d_dst = lax.rsqrt(jnp.maximum(deg_ref[...], 1.0))
        out = acc_ref[...] * d_dst + b_ref[...]
        o_ref[...] = jnp.maximum(out, 0.0).astype(o_ref.dtype)


# ---------------------------------------------------------------------------
# Layer wrappers (operate on padded tensors, return padded activations)
# ---------------------------------------------------------------------------
def _gcn_layer_fused(adj_p, x_p, w_p, b_p, dsrc_p, out_dtype):
    nd_p, ns_p = adj_p.shape
    in_f_p = x_p.shape[1]
    out_f_p = w_p.shape[1]
    tm = _pick_tile(nd_p, (256, 128))        # 256 when divisible (v6e/v7x MXU)
    tk = _pick_tile(ns_p, (512, 256, 128))   # deep contraction amortizes acc RMW

    xbytes = x_p.dtype.itemsize
    obytes = jnp.dtype(out_dtype).itemsize
    est = (2 * tk * 4 + 2 * tk * in_f_p * xbytes + 2 * in_f_p * out_f_p * 2
           + 2 * out_f_p * 4 + 2 * tm * tk * 2 + 2 * tm * out_f_p * obytes
           + ns_p * out_f_p * 2 + tm * out_f_p * 4 + tm * 4)

    # TODO(synk): X/d_src stripes are re-streamed once per dst tile when the dst
    # grid has >1 step; negligible for sampled blocks but could be skipped with
    # a conditional index_map for very large graphs.
    return pl.pallas_call(
        _make_fused_gcn_kernel(tk),
        out_shape=jax.ShapeDtypeStruct((nd_p, out_f_p), out_dtype),
        grid_spec=pltpu.PrefetchScalarGridSpec(
            num_scalar_prefetch=0,
            grid=(nd_p // tm, ns_p // tk),
            in_specs=[
                pl.BlockSpec((tk, 1), lambda i, k: (k, 0)),            # d_src stripe
                pl.BlockSpec((tk, in_f_p), lambda i, k: (k, 0)),       # X stripe
                pl.BlockSpec((in_f_p, out_f_p), lambda i, k: (0, 0)),  # full W (resident)
                pl.BlockSpec((1, out_f_p), lambda i, k: (0, 0)),       # bias row
                pl.BlockSpec((tm, tk), lambda i, k: (i, k)),           # A tile
            ],
            out_specs=pl.BlockSpec((tm, out_f_p), lambda i, k: (i, 0)),
            scratch_shapes=[
                pltpu.VMEM((ns_p, out_f_p), jnp.bfloat16),  # persistent XW
                pltpu.VMEM((tm, out_f_p), jnp.float32),     # f32 accumulator
                pltpu.VMEM((tm, 1), jnp.float32),           # row-degree accumulator
            ],
        ),
        # dst axis must be sequential ("arbitrary"): the XW scratch is filled on
        # i==0 and a megacore-sharded core would see uninitialized scratch.
        compiler_params=pltpu.CompilerParams(
            dimension_semantics=("arbitrary", "arbitrary"),
            vmem_limit_bytes=_vmem_limit(est)),
    )(dsrc_p, x_p, w_p, b_p, adj_p)


def _gcn_layer_split(adj_p, x_p, w_p, b_p, dsrc_p, out_dtype):
    nd_p, ns_p = adj_p.shape
    in_f_p = x_p.shape[1]
    out_f_p = w_p.shape[1]

    # Stage 1: XW = (d_src * X) @ W, computed exactly once, emitted in bf16.
    ts = _pick_tile(ns_p, (256, 128))
    xbytes = x_p.dtype.itemsize
    est1 = (2 * ts * 4 + 2 * ts * in_f_p * xbytes + 2 * in_f_p * out_f_p * 2
            + 2 * ts * out_f_p * 2)
    # TODO(synk): for very large out_f on v7x, W should additionally be tiled
    # along out_f (extra grid axis) instead of being kept fully resident.
    xw = pl.pallas_call(
        _xw_kernel,
        out_shape=jax.ShapeDtypeStruct((ns_p, out_f_p), jnp.bfloat16),
        grid_spec=pltpu.PrefetchScalarGridSpec(
            num_scalar_prefetch=0,
            grid=(ns_p // ts,),
            in_specs=[
                pl.BlockSpec((ts, 1), lambda i: (i, 0)),
                pl.BlockSpec((ts, in_f_p), lambda i: (i, 0)),
                pl.BlockSpec((in_f_p, out_f_p), lambda i: (0, 0)),
            ],
            out_specs=pl.BlockSpec((ts, out_f_p), lambda i: (i, 0)),
        ),
        compiler_params=pltpu.CompilerParams(
            dimension_semantics=("parallel",),
            vmem_limit_bytes=_vmem_limit(est1)),
    )(dsrc_p, x_p, w_p)

    # Stage 2: out = relu(d_dst * (A @ XW) + b), K-tiled with f32 accumulator.
    tm = _pick_tile(nd_p, (256, 128))
    tk = _pick_tile(ns_p, (512, 256, 128))
    obytes = jnp.dtype(out_dtype).itemsize
    est2 = (2 * tm * tk * 2 + 2 * tk * out_f_p * 2 + 2 * out_f_p * 4
            + 2 * tm * out_f_p * obytes + tm * out_f_p * 4 + tm * 4)
    return pl.pallas_call(
        _agg_kernel,
        out_shape=jax.ShapeDtypeStruct((nd_p, out_f_p), out_dtype),
        grid_spec=pltpu.PrefetchScalarGridSpec(
            num_scalar_prefetch=0,
            grid=(nd_p // tm, ns_p // tk),
            in_specs=[
                pl.BlockSpec((tm, tk), lambda i, k: (i, k)),
                pl.BlockSpec((tk, out_f_p), lambda i, k: (k, 0)),
                pl.BlockSpec((1, out_f_p), lambda i, k: (0, 0)),
            ],
            out_specs=pl.BlockSpec((tm, out_f_p), lambda i, k: (i, 0)),
            scratch_shapes=[
                pltpu.VMEM((tm, out_f_p), jnp.float32),
                pltpu.VMEM((tm, 1), jnp.float32),
            ],
        ),
        compiler_params=pltpu.CompilerParams(
            dimension_semantics=("parallel", "arbitrary"),
            vmem_limit_bytes=_vmem_limit(est2)),
    )(adj_p, xw, b_p)


def gcn_layer(adj_p, x_p, w, b, out_dtype, force_split=False):
    """One GraphConv + ReLU layer on padded inputs.

    adj_p: [n_dst_p, n_src_p] bf16 0/1, zero-padded.
    x_p:   [n_src_p, in_f_p]  f32 or bf16 features, zero-padded.
    w:     [in_f, out_f] f32 (unpadded); b: [1, out_f] f32.
    Returns padded [n_dst_p, out_f_p] activations of dtype out_dtype.
    """
    nd_p, ns_p = adj_p.shape
    in_f_p = x_p.shape[1]
    out_f = w.shape[1]
    out_f_p = _round_up(out_f, _LANE)

    w_p = _pad2d(w.astype(jnp.float32), in_f_p, out_f_p).astype(jnp.bfloat16)
    b_p = _pad2d(b.reshape(1, -1).astype(jnp.float32), 1, out_f_p)

    # Source-side normalization deg_src^{-1/2} (column sums of A, clamped >= 1).
    # d_dst (row sums) is fused into the aggregation kernel itself.
    deg_src = jnp.sum(adj_p.astype(jnp.float32), axis=0, keepdims=True)
    dsrc_p = lax.rsqrt(jnp.maximum(deg_src, 1.0)).reshape(ns_p, 1)

    if (not force_split) and ns_p * out_f_p * 2 <= _FUSE_XW_VMEM_BYTES:
        return _gcn_layer_fused(adj_p, x_p, w_p, b_p, dsrc_p, out_dtype)
    return _gcn_layer_split(adj_p, x_p, w_p, b_p, dsrc_p, out_dtype)


# ---------------------------------------------------------------------------
# StochasticTwoLayerGCN forward (jit'ed; padded bf16 activations between layers)
# ---------------------------------------------------------------------------
@functools.partial(jax.jit, static_argnames=("force_split",))
def stochastic_two_layer_gcn(blocks, x, params, force_split=False):
    """blocks = (block0 [n_mid, n_src], block1 [n_dst, n_mid]) dense 0/1 adjacencies."""
    block0, block1 = blocks
    n_mid, n_src = block0.shape
    n_dst = block1.shape[0]
    out_f = params["w2"].shape[1]

    n_src_p = _round_up(n_src, _LANE)
    n_mid_p = _round_up(n_mid, _LANE)
    n_dst_p = _round_up(n_dst, _LANE)
    in_f_p = _round_up(params["w1"].shape[0], _LANE)

    # 0/1 adjacencies are exact in bf16; zero padding keeps padded rows/cols inert.
    b0_p = _pad2d(block0, n_mid_p, n_src_p).astype(jnp.bfloat16)
    b1_p = _pad2d(block1, n_dst_p, n_mid_p).astype(jnp.bfloat16)
    x_p = _pad2d(x.astype(jnp.float32), n_src_p, in_f_p)

    # Hidden activations stay padded + bf16 between layers.  Padded rows may hold
    # relu(bias) garbage, but the next layer's adjacency columns for them are 0,
    # so they never reach the (sliced) final output.
    h_p = gcn_layer(b0_p, x_p, params["w1"], params["b1"],
                    out_dtype=jnp.bfloat16, force_split=force_split)
    out_p = gcn_layer(b1_p, h_p, params["w2"], params["b2"],
                      out_dtype=jnp.float32, force_split=force_split)
    return out_p[:n_dst, :out_f]


def init_params(key, in_features, hidden_features, out_features):
    k1, k2 = jax.random.split(key)

    # DGL GraphConv: xavier_uniform weight, zero bias.
    def xavier(k, fan_in, fan_out):
        limit = jnp.sqrt(6.0 / (fan_in + fan_out))
        return jax.random.uniform(k, (fan_in, fan_out), jnp.float32, -limit, limit)

    return {
        "w1": xavier(k1, in_features, hidden_features),
        "b1": jnp.zeros((1, hidden_features), jnp.float32),
        "w2": xavier(k2, hidden_features, out_features),
        "b2": jnp.zeros((1, out_features), jnp.float32),
    }


# Pure-JAX f32 reference for a sanity check.
def _ref_layer(adj, x, w, b):
    dsrc = jnp.maximum(adj.sum(axis=0), 1.0) ** -0.5
    ddst = jnp.maximum(adj.sum(axis=1), 1.0) ** -0.5
    return jnp.maximum(ddst[:, None] * (adj @ ((x * dsrc[:, None]) @ w)) + b, 0.0)


def _ref_forward(blocks, x, params):
    h = _ref_layer(blocks[0], x, params["w1"], params["b1"])
    return _ref_layer(blocks[1], h, params["w2"], params["b2"])


# TODO(synk): real DGL blocks are sparse (COO/CSR); sparse gather/scatter
# message passing has no clean dense-Pallas equivalent here, so blocks are
# represented as dense bipartite adjacencies.

if __name__ == "__main__":
    key = jax.random.PRNGKey(0)
    k_adj1, k_adj2, k_x, k_params = jax.random.split(key, 4)

    in_features, hidden_features, out_features = 16, 32, 8
    n_src, n_mid, n_dst = 64, 32, 16   # nodes per sampled layer (block fan-in)

    block0 = jax.random.bernoulli(k_adj1, 0.25, (n_mid, n_src)).astype(jnp.float32)
    block1 = jax.random.bernoulli(k_adj2, 0.25, (n_dst, n_mid)).astype(jnp.float32)
    x = jax.random.normal(k_x, (n_src, in_features), jnp.float32)
    params = init_params(k_params, in_features, hidden_features, out_features)

    ref = _ref_forward((block0, block1), x, params)

    # Fused single-kernel-per-layer path (default for sampled-block sizes).
    out = stochastic_two_layer_gcn((block0, block1), x, params, force_split=False)
    jax.block_until_ready(out)
    assert out.shape == (n_dst, out_features)
    assert jnp.allclose(out, ref, rtol=5e-2, atol=5e-2), "fused path mismatch vs reference"

    # Two-kernel fallback path (large-XW regime) — exercise it as well.
    out_split = stochastic_two_layer_gcn((block0, block1), x, params, force_split=True)
    jax.block_until_ready(out_split)
    assert jnp.allclose(out_split, ref, rtol=5e-2, atol=5e-2), "split path mismatch vs reference"

    print("KERNEL_OK")
</pallas_src>

<mosaic_0001>
module attributes {stable_mosaic.version = 11 : i64} {
  func.func @kernel(%arg0: i32, %arg1: i32, %arg2: memref<128x1xf32, #tpu.memory_space<vmem>>, %arg3: memref<128x128xf32, #tpu.memory_space<vmem>>, %arg4: memref<128x128xbf16, #tpu.memory_space<vmem>>, %arg5: memref<1x128xf32, #tpu.memory_space<vmem>>, %arg6: memref<128x128xbf16, #tpu.memory_space<vmem>>, %arg7: memref<128x128xbf16, #tpu.memory_space<vmem>>, %arg8: memref<128x128xbf16, #tpu.memory_space<vmem>>, %arg9: memref<128x128xf32, #tpu.memory_space<vmem>>, %arg10: memref<128x1xf32, #tpu.memory_space<vmem>>) attributes {dimension_semantics = [#tpu.dimension_semantics<arbitrary>, #tpu.dimension_semantics<arbitrary>], iteration_bounds = array<i64: 1, 1>, scalar_prefetch = 0 : i64, scratch_operands = 3 : i64, tpu.core_type = #tpu.core_type<tc>, window_params = [{transform_indices = @transform_0, window_bounds = array<i64: 128, 1>}, {transform_indices = @transform_1, window_bounds = array<i64: 128, 128>}, {pipeline_mode = #tpu.pipeline_mode<synchronous>, transform_indices = @transform_2, window_bounds = array<i64: 128, 128>}, {pipeline_mode = #tpu.pipeline_mode<synchronous>, transform_indices = @transform_3, window_bounds = array<i64: 1, 128>}, {transform_indices = @transform_4, window_bounds = array<i64: 128, 128>}, {transform_indices = @transform_5, window_bounds = array<i64: 128, 128>}]} {
    %c128_i32 = arith.constant 128 : i32
    %0 = arith.muli %arg1, %c128_i32 : i32
    %1 = tpu.assume_multiple %0, 128 : i32
    %c0_i32 = arith.constant 0 : i32
    %2 = arith.cmpi eq, %arg0, %c0_i32 : i32
    %3 = arith.extui %2 : i1 to i32
    %c0_i32_0 = arith.constant 0 : i32
    %4 = arith.cmpi ne, %3, %c0_i32_0 : i32
    scf.if %4 {
      %c0_16 = arith.constant 0 : index
      %c0_17 = arith.constant 0 : index
      %24 = vector.load %arg3[%c0_16, %c0_17] : memref<128x128xf32, #tpu.memory_space<vmem>>, vector<128x128xf32>
      %c0_18 = arith.constant 0 : index
      %c0_19 = arith.constant 0 : index
      %25 = vector.load %arg2[%c0_18, %c0_19] : memref<128x1xf32, #tpu.memory_space<vmem>>, vector<128x1xf32>
      %26 = vector.broadcast %25 : vector<128x1xf32> to vector<128x128xf32>
      %27 = arith.mulf %24, %26 : vector<128x128xf32>
      %28 = arith.truncf %27 : vector<128x128xf32> to vector<128x128xbf16>
      %c0_20 = arith.constant 0 : index
      %c0_21 = arith.constant 0 : index
      %29 = vector.load %arg4[%c0_20, %c0_21] : memref<128x128xbf16, #tpu.memory_space<vmem>>, vector<128x128xbf16>
      %cst_22 = arith.constant dense<0.000000e+00> : vector<128x128xf32>
      %30 = tpu.matmul %28, %29, %cst_22 {dimension_numbers = #tpu.dot_dimension_numbers<[1], [0], [0], [1], [0, 0, 1, 1], [], []>} : vector<128x128xbf16>, vector<128x128xbf16>, vector<128x128xf32> -> vector<128x128xf32>
      %31 = arith.truncf %30 : vector<128x128xf32> to vector<128x128xbf16>
      %32 = arith.index_cast %1 : i32 to index
      %c0_23 = arith.constant 0 : index
      %33 = vector.load %arg8[%32, %c0_23] : memref<128x128xbf16, #tpu.memory_space<vmem>>, vector<128x128xbf16>
      tpu.vector_store %arg8[%32, %c0_23], %31 {strides = array<i32>} : memref<128x128xbf16, #tpu.memory_space<vmem>>, vector<128x128xbf16>,
    } else {
    }
    %c0_i32_1 = arith.constant 0 : i32
    %5 = arith.cmpi eq, %arg1, %c0_i32_1 : i32
    %6 = arith.extui %5 : i1 to i32
    %c0_i32_2 = arith.constant 0 : i32
    %7 = arith.cmpi ne, %6, %c0_i32_2 : i32
    scf.if %7 {
      %cst_16 = arith.constant 0.000000e+00 : f32
      %24 = vector.broadcast %cst_16 : f32 to vector<128x128xf32>
      %c0_17 = arith.constant 0 : index
      %c0_18 = arith.constant 0 : index
      %25 = vector.load %arg9[%c0_17, %c0_18] : memref<128x128xf32, #tpu.memory_space<vmem>>, vector<128x128xf32>
      tpu.vector_store %arg9[%c0_17, %c0_18], %24 {strides = array<i32>} : memref<128x128xf32, #tpu.memory_space<vmem>>, vector<128x128xf32>,
      %cst_19 = arith.constant 0.000000e+00 : f32
      %26 = vector.broadcast %cst_19 : f32 to vector<128x1xf32>
      %c0_20 = arith.constant 0 : index
      %c0_21 = arith.constant 0 : index
      %27 = vector.load %arg10[%c0_20, %c0_21] : memref<128x1xf32, #tpu.memory_space<vmem>>, vector<128x1xf32>
      tpu.vector_store %arg10[%c0_20, %c0_21], %26 {strides = array<i32>} : memref<128x1xf32, #tpu.memory_space<vmem>>, vector<128x1xf32>,
    } else {
    }
    %c0 = arith.constant 0 : index
    %c0_3 = arith.constant 0 : index
    %8 = vector.load %arg6[%c0, %c0_3] : memref<128x128xbf16, #tpu.memory_space<vmem>>, vector<128x128xbf16>
    %c0_4 = arith.constant 0 : index
    %c0_5 = arith.constant 0 : index
    %9 = vector.load %arg10[%c0_4, %c0_5] : memref<128x1xf32, #tpu.memory_space<vmem>>, vector<128x1xf32>
    %10 = arith.extf %8 : vector<128x128xbf16> to vector<128x128xf32>
    %cst = arith.constant dense<0.000000e+00> : vector<128xf32>
    %11 = vector.multi_reduction <add>, %10, %cst [1] : vector<128x128xf32> to vector<128xf32>
    %12 = vector.shape_cast %11 : vector<128xf32> to vector<128x1xf32>
    %13 = arith.addf %9, %12 : vector<128x1xf32>
    %c0_6 = arith.constant 0 : index
    %c0_7 = arith.constant 0 : index
    %14 = vector.load %arg10[%c0_6, %c0_7] : memref<128x1xf32, #tpu.memory_space<vmem>>, vector<128x1xf32>
    tpu.vector_store %arg10[%c0_6, %c0_7], %13 {strides = array<i32>} : memref<128x1xf32, #tpu.memory_space<vmem>>, vector<128x1xf32>,
    %c0_8 = arith.constant 0 : index
    %c0_9 = arith.constant 0 : index
    %15 = vector.load %arg9[%c0_8, %c0_9] : memref<128x128xf32, #tpu.memory_space<vmem>>, vector<128x128xf32>
    %16 = arith.index_cast %1 : i32 to index
    %c0_10 = arith.constant 0 : index
    %17 = vector.load %arg8[%16, %c0_10] : memref<128x128xbf16, #tpu.memory_space<vmem>>, vector<128x128xbf16>
    %cst_11 = arith.constant dense<0.000000e+00> : vector<128x128xf32>
    %18 = tpu.matmul %8, %17, %cst_11 {dimension_numbers = #tpu.dot_dimension_numbers<[1], [0], [0], [1], [0, 0, 1, 1], [], []>} : vector<128x128xbf16>, vector<128x128xbf16>, vector<128x128xf32> -> vector<128x128xf32>
    %19 = arith.addf %15, %18 : vector<128x128xf32>
    %c0_12 = arith.constant 0 : index
    %c0_13 = arith.constant 0 : index
    %20 = vector.load %arg9[%c0_12, %c0_13] : memref<128x128xf32, #tpu.memory_space<vmem>>, vector<128x128xf32>
    tpu.vector_store %arg9[%c0_12, %c0_13], %19 {strides = array<i32>} : memref<128x128xf32, #tpu.memory_space<vmem>>, vector<128x128xf32>,
    %c0_i32_14 = arith.constant 0 : i32
    %21 = arith.cmpi eq, %arg1, %c0_i32_14 : i32
    %22 = arith.extui %21 : i1 to i32
    %c0_i32_15 = arith.constant 0 : i32
    %23 = arith.cmpi ne, %22, %c0_i32_15 : i32
    scf.if %23 {
      %c0_16 = arith.constant 0 : index
      %c0_17 = arith.constant 0 : index
      %24 = vector.load %arg10[%c0_16, %c0_17] : memref<128x1xf32, #tpu.memory_space<vmem>>, vector<128x1xf32>
      %cst_18 = arith.constant 1.000000e+00 : f32
      %25 = vector.broadcast %cst_18 : f32 to vector<128x1xf32>
      %26 = arith.maximumf %24, %25 : vector<128x1xf32>
      %27 = math.rsqrt %26 : vector<128x1xf32>
      %c0_19 = arith.constant 0 : index
      %c0_20 = arith.constant 0 : index
      %28 = vector.load %arg9[%c0_19, %c0_20] : memref<128x128xf32, #tpu.memory_space<vmem>>, vector<128x128xf32>
      %29 = vector.broadcast %27 : vector<128x1xf32> to vector<128x128xf32>
      %30 = arith.mulf %28, %29 : vector<128x128xf32>
      %c0_21 = arith.constant 0 : index
      %c0_22 = arith.constant 0 : index
      %31 = vector.load %arg5[%c0_21, %c0_22] : memref<1x128xf32, #tpu.memory_space<vmem>>, vector<1x128xf32>
      %32 = vector.broadcast %31 : vector<1x128xf32> to vector<128x128xf32>
      %33 = arith.addf %30, %32 : vector<128x128xf32>
      %cst_23 = arith.constant 0.000000e+00 : f32
      %34 = vector.broadcast %cst_23 : f32 to vector<128x128xf32>
      %35 = arith.maximumf %33, %34 : vector<128x128xf32>
      %36 = arith.truncf %35 : vector<128x128xf32> to vector<128x128xbf16>
      %c0_24 = arith.constant 0 : index
      %c0_25 = arith.constant 0 : index
      %37 = vector.load %arg7[%c0_24, %c0_25] : memref<128x128xbf16, #tpu.memory_space<vmem>>, vector<128x128xbf16>
      tpu.vector_store %arg7[%c0_24, %c0_25], %36 {strides = array<i32>} : memref<128x128xbf16, #tpu.memory_space<vmem>>, vector<128x128xbf16>,
    } else {
    }
    return
  }
  func.func @transform_0(%arg0: i32, %arg1: i32) -> (i32, i32) {
    %c0_i32 = arith.constant 0 : i32
    %c0_i32_0 = arith.constant 0 : i32
    return %arg1, %c0_i32 : i32, i32
  }
  func.func @transform_1(%arg0: i32, %arg1: i32) -> (i32, i32) {
    %c0_i32 = arith.constant 0 : i32
    %c0_i32_0 = arith.constant 0 : i32
    return %arg1, %c0_i32 : i32, i32
  }
  func.func @transform_2(%arg0: i32, %arg1: i32) -> (i32, i32) {
    %c0_i32 = arith.constant 0 : i32
    %c0_i32_0 = arith.constant 0 : i32
    %c0_i32_1 = arith.constant 0 : i32
    return %c0_i32, %c0_i32_0 : i32, i32
  }
  func.func @transform_3(%arg0: i32, %arg1: i32) -> (i32, i32) {
    %c0_i32 = arith.constant 0 : i32
    %c0_i32_0 = arith.constant 0 : i32
    %c0_i32_1 = arith.constant 0 : i32
    return %c0_i32, %c0_i32_0 : i32, i32
  }
  func.func @transform_4(%arg0: i32, %arg1: i32) -> (i32, i32) {
    %c0_i32 = arith.constant 0 : i32
    return %arg0, %arg1 : i32, i32
  }
  func.func @transform_5(%arg0: i32, %arg1: i32) -> (i32, i32) {
    %c0_i32 = arith.constant 0 : i32
    %c0_i32_0 = arith.constant 0 : i32
    return %arg0, %c0_i32 : i32, i32
  }
}

module attributes {stable_mosaic.version = 11 : i64} {
  func.func @kernel(%arg0: i32, %arg1: i32, %arg2: memref<128x1xf32, #tpu.memory_space<vmem>>, %arg3: memref<128x128xbf16, #tpu.memory_space<vmem>>, %arg4: memref<128x128xbf16, #tpu.memory_space<vmem>>, %arg5: memref<1x128xf32, #tpu.memory_space<vmem>>, %arg6: memref<128x128xbf16, #tpu.memory_space<vmem>>, %arg7: memref<128x128xf32, #tpu.memory_space<vmem>>, %arg8: memref<128x128xbf16, #tpu.memory_space<vmem>>, %arg9: memref<128x128xf32, #tpu.memory_space<vmem>>, %arg10: memref<128x1xf32, #tpu.memory_space<vmem>>) attributes {dimension_semantics = [#tpu.dimension_semantics<arbitrary>, #tpu.dimension_semantics<arbitrary>], iteration_bounds = array<i64: 1, 1>, scalar_prefetch = 0 : i64, scratch_operands = 3 : i64, tpu.core_type = #tpu.core_type<tc>, window_params = [{transform_indices = @transform_0, window_bounds = array<i64: 128, 1>}, {transform_indices = @transform_1, window_bounds = array<i64: 128, 128>}, {pipeline_mode = #tpu.pipeline_mode<synchronous>, transform_indices = @transform_2, window_bounds = array<i64: 128, 128>}, {pipeline_mode = #tpu.pipeline_mode<synchronous>, transform_indices = @transform_3, window_bounds = array<i64: 1, 128>}, {transform_indices = @transform_4, window_bounds = array<i64: 128, 128>}, {transform_indices = @transform_5, window_bounds = array<i64: 128, 128>}]} {
    %c128_i32 = arith.constant 128 : i32
    %0 = arith.muli %arg1, %c128_i32 : i32
    %1 = tpu.assume_multiple %0, 128 : i32
    %c0_i32 = arith.constant 0 : i32
    %2 = arith.cmpi eq, %arg0, %c0_i32 : i32
    %3 = arith.extui %2 : i1 to i32
    %c0_i32_0 = arith.constant 0 : i32
    %4 = arith.cmpi ne, %3, %c0_i32_0 : i32
    scf.if %4 {
      %c0_16 = arith.constant 0 : index
      %c0_17 = arith.constant 0 : index
      %24 = vector.load %arg3[%c0_16, %c0_17] : memref<128x128xbf16, #tpu.memory_space<vmem>>, vector<128x128xbf16>
      %25 = arith.extf %24 : vector<128x128xbf16> to vector<128x128xf32>
      %c0_18 = arith.constant 0 : index
      %c0_19 = arith.constant 0 : index
      %26 = vector.load %arg2[%c0_18, %c0_19] : memref<128x1xf32, #tpu.memory_space<vmem>>, vector<128x1xf32>
      %27 = vector.broadcast %26 : vector<128x1xf32> to vector<128x128xf32>
      %28 = arith.mulf %25, %27 : vector<128x128xf32>
      %29 = arith.truncf %28 : vector<128x128xf32> to vector<128x128xbf16>
      %c0_20 = arith.constant 0 : index
      %c0_21 = arith.constant 0 : index
      %30 = vector.load %arg4[%c0_20, %c0_21] : memref<128x128xbf16, #tpu.memory_space<vmem>>, vector<128x128xbf16>
      %cst_22 = arith.constant dense<0.000000e+00> : vector<128x128xf32>
      %31 = tpu.matmul %29, %30, %cst_22 {dimension_numbers = #tpu.dot_dimension_numbers<[1], [0], [0], [1], [0, 0, 1, 1], [], []>} : vector<128x128xbf16>, vector<128x128xbf16>, vector<128x128xf32> -> vector<128x128xf32>
      %32 = arith.truncf %31 : vector<128x128xf32> to vector<128x128xbf16>
      %33 = arith.index_cast %1 : i32 to index
      %c0_23 = arith.constant 0 : index
      %34 = vector.load %arg8[%33, %c0_23] : memref<128x128xbf16, #tpu.memory_space<vmem>>, vector<128x128xbf16>
      tpu.vector_store %arg8[%33, %c0_23], %32 {strides = array<i32>} : memref<128x128xbf16, #tpu.memory_space<vmem>>, vector<128x128xbf16>,
    } else {
    }
    %c0_i32_1 = arith.constant 0 : i32
    %5 = arith.cmpi eq, %arg1, %c0_i32_1 : i32
    %6 = arith.extui %5 : i1 to i32
    %c0_i32_2 = arith.constant 0 : i32
    %7 = arith.cmpi ne, %6, %c0_i32_2 : i32
    scf.if %7 {
      %cst_16 = arith.constant 0.000000e+00 : f32
      %24 = vector.broadcast %cst_16 : f32 to vector<128x128xf32>
      %c0_17 = arith.constant 0 : index
      %c0_18 = arith.constant 0 : index
      %25 = vector.load %arg9[%c0_17, %c0_18] : memref<128x128xf32, #tpu.memory_space<vmem>>, vector<128x128xf32>
      tpu.vector_store %arg9[%c0_17, %c0_18], %24 {strides = array<i32>} : memref<128x128xf32, #tpu.memory_space<vmem>>, vector<128x128xf32>,
      %cst_19 = arith.constant 0.000000e+00 : f32
      %26 = vector.broadcast %cst_19 : f32 to vector<128x1xf32>
      %c0_20 = arith.constant 0 : index
      %c0_21 = arith.constant 0 : index
      %27 = vector.load %arg10[%c0_20, %c0_21] : memref<128x1xf32, #tpu.memory_space<vmem>>, vector<128x1xf32>
      tpu.vector_store %arg10[%c0_20, %c0_21], %26 {strides = array<i32>} : memref<128x1xf32, #tpu.memory_space<vmem>>, vector<128x1xf32>,
    } else {
    }
    %c0 = arith.constant 0 : index
    %c0_3 = arith.constant 0 : index
    %8 = vector.load %arg6[%c0, %c0_3] : memref<128x128xbf16, #tpu.memory_space<vmem>>, vector<128x128xbf16>
    %c0_4 = arith.constant 0 : index
    %c0_5 = arith.constant 0 : index
    %9 = vector.load %arg10[%c0_4, %c0_5] : memref<128x1xf32, #tpu.memory_space<vmem>>, vector<128x1xf32>
    %10 = arith.extf %8 : vector<128x128xbf16> to vector<128x128xf32>
    %cst = arith.constant dense<0.000000e+00> : vector<128xf32>
    %11 = vector.multi_reduction <add>, %10, %cst [1] : vector<128x128xf32> to vector<128xf32>
    %12 = vector.shape_cast %11 : vector<128xf32> to vector<128x1xf32>
    %13 = arith.addf %9, %12 : vector<128x1xf32>
    %c0_6 = arith.constant 0 : index
    %c0_7 = arith.constant 0 : index
    %14 = vector.load %arg10[%c0_6, %c0_7] : memref<128x1xf32, #tpu.memory_space<vmem>>, vector<128x1xf32>
    tpu.vector_store %arg10[%c0_6, %c0_7], %13 {strides = array<i32>} : memref<128x1xf32, #tpu.memory_space<vmem>>, vector<128x1xf32>,
    %c0_8 = arith.constant 0 : index
    %c0_9 = arith.constant 0 : index
    %15 = vector.load %arg9[%c0_8, %c0_9] : memref<128x128xf32, #tpu.memory_space<vmem>>, vector<128x128xf32>
    %16 = arith.index_cast %1 : i32 to index
    %c0_10 = arith.constant 0 : index
    %17 = vector.load %arg8[%16, %c0_10] : memref<128x128xbf16, #tpu.memory_space<vmem>>, vector<128x128xbf16>
    %cst_11 = arith.constant dense<0.000000e+00> : vector<128x128xf32>
    %18 = tpu.matmul %8, %17, %cst_11 {dimension_numbers = #tpu.dot_dimension_numbers<[1], [0], [0], [1], [0, 0, 1, 1], [], []>} : vector<128x128xbf16>, vector<128x128xbf16>, vector<128x128xf32> -> vector<128x128xf32>
    %19 = arith.addf %15, %18 : vector<128x128xf32>
    %c0_12 = arith.constant 0 : index
    %c0_13 = arith.constant 0 : index
    %20 = vector.load %arg9[%c0_12, %c0_13] : memref<128x128xf32, #tpu.memory_space<vmem>>, vector<128x128xf32>
    tpu.vector_store %arg9[%c0_12, %c0_13], %19 {strides = array<i32>} : memref<128x128xf32, #tpu.memory_space<vmem>>, vector<128x128xf32>,
    %c0_i32_14 = arith.constant 0 : i32
    %21 = arith.cmpi eq, %arg1, %c0_i32_14 : i32
    %22 = arith.extui %21 : i1 to i32
    %c0_i32_15 = arith.constant 0 : i32
    %23 = arith.cmpi ne, %22, %c0_i32_15 : i32
    scf.if %23 {
      %c0_16 = arith.constant 0 : index
      %c0_17 = arith.constant 0 : index
      %24 = vector.load %arg10[%c0_16, %c0_17] : memref<128x1xf32, #tpu.memory_space<vmem>>, vector<128x1xf32>
      %cst_18 = arith.constant 1.000000e+00 : f32
      %25 = vector.broadcast %cst_18 : f32 to vector<128x1xf32>
      %26 = arith.maximumf %24, %25 : vector<128x1xf32>
      %27 = math.rsqrt %26 : vector<128x1xf32>
      %c0_19 = arith.constant 0 : index
      %c0_20 = arith.constant 0 : index
      %28 = vector.load %arg9[%c0_19, %c0_20] : memref<128x128xf32, #tpu.memory_space<vmem>>, vector<128x128xf32>
      %29 = vector.broadcast %27 : vector<128x1xf32> to vector<128x128xf32>
      %30 = arith.mulf %28, %29 : vector<128x128xf32>
      %c0_21 = arith.constant 0 : index
      %c0_22 = arith.constant 0 : index
      %31 = vector.load %arg5[%c0_21, %c0_22] : memref<1x128xf32, #tpu.memory_space<vmem>>, vector<1x128xf32>
      %32 = vector.broadcast %31 : vector<1x128xf32> to vector<128x128xf32>
      %33 = arith.addf %30, %32 : vector<128x128xf32>
      %cst_23 = arith.constant 0.000000e+00 : f32
      %34 = vector.broadcast %cst_23 : f32 to vector<128x128xf32>
      %35 = arith.maximumf %33, %34 : vector<128x128xf32>
      %c0_24 = arith.constant 0 : index
      %c0_25 = arith.constant 0 : index
      %36 = vector.load %arg7[%c0_24, %c0_25] : memref<128x128xf32, #tpu.memory_space<vmem>>, vector<128x128xf32>
      tpu.vector_store %arg7[%c0_24, %c0_25], %35 {strides = array<i32>} : memref<128x128xf32, #tpu.memory_space<vmem>>, vector<128x128xf32>,
    } else {
    }
    return
  }
  func.func @transform_0(%arg0: i32, %arg1: i32) -> (i32, i32) {
    %c0_i32 = arith.constant 0 : i32
    %c0_i32_0 = arith.constant 0 : i32
    return %arg1, %c0_i32 : i32, i32
  }
  func.func @transform_1(%arg0: i32, %arg1: i32) -> (i32, i32) {
    %c0_i32 = arith.constant 0 : i32
    %c0_i32_0 = arith.constant 0 : i32
    return %arg1, %c0_i32 : i32, i32
  }
  func.func @transform_2(%arg0: i32, %arg1: i32) -> (i32, i32) {
    %c0_i32 = arith.constant 0 : i32
    %c0_i32_0 = arith.constant 0 : i32
    %c0_i32_1 = arith.constant 0 : i32
    return %c0_i32, %c0_i32_0 : i32, i32
  }
  func.func @transform_3(%arg0: i32, %arg1: i32) -> (i32, i32) {
    %c0_i32 = arith.constant 0 : i32
    %c0_i32_0 = arith.constant 0 : i32
    %c0_i32_1 = arith.constant 0 : i32
    return %c0_i32, %c0_i32_0 : i32, i32
  }
  func.func @transform_4(%arg0: i32, %arg1: i32) -> (i32, i32) {
    %c0_i32 = arith.constant 0 : i32
    return %arg0, %arg1 : i32, i32
  }
  func.func @transform_5(%arg0: i32, %arg1: i32) -> (i32, i32) {
    %c0_i32 = arith.constant 0 : i32
    %c0_i32_0 = arith.constant 0 : i32
    return %arg0, %c0_i32 : i32, i32
  }
}

</mosaic_0001>

<bundles_post_ra>
// kernel: stochastic_two_layer_gcn.2
= control target key start
LH: loop header
LB: loop body
LE: loop exit
PB: predicated region body
PF: predicated region fallthrough
CT: control target
= control target key end

     0   :  { %v1239_v0 = vmov 0   ;;  %vm363_vm0 = vcmask 7168   ;;  %v1240_v25 = vmov 0.0   ;;  %s1532_s0 = inlined_call_operand.vmem [shape: f32[128,1], index: 0, kind: input, shape index: {}]   ;;  %s1533_s2 = inlined_call_operand.vmem [shape: bf16[128,128], index: 2, kind: input, shape index: {}]   ;;  %s1534_s4 = inlined_call_operand.vmem [shape: bf16[128,128], index: 4, kind: input, shape index: {}]   ;;  %s1535_s1 = inlined_call_operand.vmem [shape: f32[128,128], index: 1, kind: input, shape index: {}]   ;;  %s1536_s3 = inlined_call_operand.vmem [shape: f32[1,128], index: 3, kind: input, shape index: {}]   ;;  %s1537_s5 = inlined_call_operand.vmem [shape: bf16[128,128], index: 5, kind: output, shape index: {}]  }
   0x1   :  { %1183 = vset.pattern.permute.xlu1 %v1239_v0  ;;  %1182 = vset.pattern.permute.xlu0 %v1239_v0  ;;  %v44_v1 = vld [vmem:[%s1532_s0 + $0x10] sm:$0xff]  ;;  %v42_v2 = vld [vmem:[%s1532_s0] sm:$0xff]  ;;  %v45_v3 = vld [vmem:[%s1532_s0 + $0x18] sm:$0xff]  ;;  %364 = vst.msk [vmem:[#allocation4] sm:$0xff] %vm363_vm0, %v1240_v25 }
   0x2   :  { %70 = vperm.xlu1 %1183, %v44_v1   ;;  %60 = vperm.xlu0 %1182, %v42_v2   ;;  %v43_v4 = vld [vmem:[%s1532_s0 + $0x8] sm:$0xff]  ;;  %v46_v6 = vld [vmem:[%s1532_s0 + $0x20] sm:$0xff]  ;;  %v49_v7 = vld [vmem:[%s1532_s0 + $0x38] sm:$0xff]  ;;  %365 = vst.msk [vmem:[#allocation4 + $0x8] sm:$0xff] %vm363_vm0, %v1240_v25 }
   0x3   :  { %v47_v5 = vld [vmem:[%s1532_s0 + $0x28] sm:$0xff]  ;;  %v1191_v8 = vld [vmem:[%s1533_s2] sm:$0xff]   ;;  %v48_v10 = vld [vmem:[%s1532_s0 + $0x30] sm:$0xff]  ;;  %366 = vst.msk [vmem:[#allocation4 + $0x10] sm:$0xff] %vm363_vm0, %v1240_v25 }
   0x4   :  { %v1192_v9 = vld [vmem:[%s1533_s2 + $0x8] sm:$0xff]   ;;  %1116 = vmatprep.subr.bf16.mxu0 %v1191_v8  ;;  %v1193_v11 = vld [vmem:[%s1533_s2 + $0x10] sm:$0xff]   ;;  %v50_v13 = vld [vmem:[%s1532_s0 + $0x40] sm:$0xff]  ;;  %367 = vst.msk [vmem:[#allocation4 + $0x18] sm:$0xff] %vm363_vm0, %v1240_v25 }
   0x5   :  { %1117 = vmatpush3.bf16.msra.mxu0 %v1191_v8  ;;  %v51_v12 = vld [vmem:[%s1532_s0 + $0x48] sm:$0xff]  ;;  %v1194_v14 = vld [vmem:[%s1533_s2 + $0x18] sm:$0xff]   ;;  %v52_v16 = vld [vmem:[%s1532_s0 + $0x50] sm:$0xff]  ;;  %368 = vst.msk [vmem:[#allocation4 + $0x20] sm:$0xff] %vm363_vm0, %v1240_v25 }
   0x6   :  { %75 = vperm.xlu1 %1183, %v45_v3   ;;  %65 = vperm.xlu0 %1182, %v43_v4   ;;  %v53_v15 = vld [vmem:[%s1532_s0 + $0x58] sm:$0xff]  ;;  %v1195_v17 = vld [vmem:[%s1533_s2 + $0x20] sm:$0xff]   ;;  %v55_v18 = vld [vmem:[%s1532_s0 + $0x68] sm:$0xff]  ;;  %369 = vst.msk [vmem:[#allocation4 + $0x28] sm:$0xff] %vm363_vm0, %v1240_v25 }
   0x7   :  { %1118 = vmatprep.subr.bf16.mxu0 %v1192_v9  ;;  %v54_v19 = vld [vmem:[%s1532_s0 + $0x60] sm:$0xff]  ;;  %v1196_v20 = vld [vmem:[%s1533_s2 + $0x28] sm:$0xff]   ;;  %v57_v21 = vld [vmem:[%s1532_s0 + $0x78] sm:$0xff]  ;;  %370 = vst.msk [vmem:[#allocation4 + $0x30] sm:$0xff] %vm363_vm0, %v1240_v25 }
   0x8   :  { %v56_v22 = vld [vmem:[%s1532_s0 + $0x70] sm:$0xff]  ;;  %v1198_v24 = vld [vmem:[%s1533_s2 + $0x38] sm:$0xff]   ;;  %371 = vst.msk [vmem:[#allocation4 + $0x38] sm:$0xff] %vm363_vm0, %v1240_v25  ;;  %372 = vst.msk [vmem:[#allocation4 + $0x40] sm:$0xff] %vm363_vm0, %v1240_v25 }
   0x9   :  { %1119 = vmatpush3.bf16.msra.mxu0 %v1192_v9  ;;  %v1197_v23 = vld [vmem:[%s1533_s2 + $0x30] sm:$0xff]   ;;  %373 = vst.msk [vmem:[#allocation4 + $0x48] sm:$0xff] %vm363_vm0, %v1240_v25  ;;  %374 = vst.msk [vmem:[#allocation4 + $0x50] sm:$0xff] %vm363_vm0, %v1240_v25  ;;  %v1362_v26 = vld [vmem:[%s1534_s4] sm:$0xff]  }
   0xa   :  { %85 = vperm.xlu1 %1183, %v47_v5   ;;  %80 = vperm.xlu0 %1182, %v46_v6   ;;  %375 = vst.msk [vmem:[#allocation4 + $0x58] sm:$0xff] %vm363_vm0, %v1240_v25  ;;  %376 = vst.msk [vmem:[#allocation4 + $0x60] sm:$0xff] %vm363_vm0, %v1240_v25  ;;  %v412_v27 = vunpack.c.l.bf16 %v1362_v26  ;;  %v1368_v28 = vld [vmem:[%s1534_s4 + $0x8] sm:$0xff]   ;;  %v413_v30 = vunpack.c.h.bf16 %v1362_v26  ;;  %v1375_v31 = vld [vmem:[%s1534_s4 + $0x10] sm:$0xff]  }
   0xb   :  { %1120 = vmatprep.subr.bf16.mxu0 %v1193_v11  ;;  %377 = vst.msk [vmem:[#allocation4 + $0x68] sm:$0xff] %vm363_vm0, %v1240_v25  ;;  %378 = vst.msk [vmem:[#allocation4 + $0x70] sm:$0xff] %vm363_vm0, %v1240_v25  ;;  %v414_v29 = vunpack.c.l.bf16 %v1368_v28  ;;  %v415_v32 = vunpack.c.h.bf16 %v1368_v28  ;;  %v416_v33 = vunpack.c.l.bf16 %v1375_v31  ;;  %v1382_v34 = vld [vmem:[%s1534_s4 + $0x18] sm:$0xff]   ;;  %v417_v35 = vunpack.c.h.bf16 %v1375_v31  ;;  %v1389_v37 = vld [vmem:[%s1534_s4 + $0x20] sm:$0xff]   ;;  %1164 = vmatprep.mubr.bf16.mxu1 %v1362_v26 }
   0xc   :  { %379 = vst.msk [vmem:[#allocation4 + $0x78] sm:$0xff] %vm363_vm0, %v1240_v25  ;;  %v418_v36 = vunpack.c.l.bf16 %v1382_v34  ;;  %v419_v38 = vunpack.c.h.bf16 %v1382_v34  ;;  %v420_v39 = vunpack.c.l.bf16 %v1389_v37  ;;  %v1396_v40 = vld [vmem:[%s1534_s4 + $0x28] sm:$0xff]   ;;  %v421_v41 = vunpack.c.h.bf16 %v1389_v37  ;;  %v1403_v43 = vld [vmem:[%s1534_s4 + $0x30] sm:$0xff]   ;;  %v1410_v46 = vld [vmem:[%s1534_s4 + $0x38] sm:$0xff]  }
   0xd   :  { %1121 = vmatpush3.bf16.msra.mxu0 %v1193_v11  ;;  %v422_v42 = vunpack.c.l.bf16 %v1396_v40  ;;  %v423_v44 = vunpack.c.h.bf16 %v1396_v40  ;;  %v424_v45 = vunpack.c.l.bf16 %v1403_v43  ;;  %v425_v47 = vunpack.c.h.bf16 %v1403_v43  ;;  %v28_v52 = vld [vmem:[%s1535_s1 + $0x10] sm:$0xff]  ;;  %v26_v53 = vld [vmem:[%s1535_s1] sm:$0xff]  ;;  %v29_v54 = vld [vmem:[%s1535_s1 + $0x18] sm:$0xff] }
   0xe   :  { %95 = vperm.xlu1 %1183, %v49_v7   ;;  %90 = vperm.xlu0 %1182, %v48_v10   ;;  %v426_v48 = vunpack.c.l.bf16 %v1410_v46  ;;  %v427_v49 = vunpack.c.h.bf16 %v1410_v46  ;;  %v27_v55 = vld [vmem:[%s1535_s1 + $0x8] sm:$0xff]  ;;  %v30_v63 = vld [vmem:[%s1535_s1 + $0x20] sm:$0xff]  ;;  %v33_v6 = vld [vmem:[%s1535_s1 + $0x38] sm:$0xff] }
   0xf   :  { %1122 = vmatprep.subr.bf16.mxu0 %v1194_v14  ;;  %v31_v62 = vld [vmem:[%s1535_s1 + $0x28] sm:$0xff]  ;;  %v32_v7 = vld [vmem:[%s1535_s1 + $0x30] sm:$0xff] }
  0x11   :  { %1123 = vmatpush3.bf16.msra.mxu0 %v1194_v14  ;;  %v34_v14 = vld [vmem:[%s1535_s1 + $0x40] sm:$0xff] }
  0x12   :  { %105 = vperm.xlu1 %1183, %v51_v12   ;;  %100 = vperm.xlu0 %1182, %v50_v13   ;;  %v35_v13 = vld [vmem:[%s1535_s1 + $0x48] sm:$0xff] }
  0x13   :  { %1124 = vmatprep.subr.bf16.mxu0 %v1195_v17 }
  0x15   :  { %1125 = vmatpush3.bf16.msra.mxu0 %v1195_v17 }
  0x16   :  { %115 = vperm.xlu1 %1183, %v53_v15   ;;  %110 = vperm.xlu0 %1182, %v52_v16  }
  0x17   :  { %1126 = vmatprep.subr.bf16.mxu0 %v1196_v20 }
  0x19   :  { %1127 = vmatpush3.bf16.msra.mxu0 %v1196_v20  ;;  %v37_v20 = vld [vmem:[%s1535_s1 + $0x58] sm:$0xff] }
  0x1a   :  { %125 = vperm.xlu1 %1183, %v55_v18   ;;  %120 = vperm.xlu0 %1182, %v54_v19  }
  0x1b   :  { %1128 = vmatprep.subr.bf16.mxu0 %v1197_v23 }
  0x1d   :  { %1129 = vmatpush3.bf16.msra.mxu0 %v1197_v23 }
  0x1e   :  { %135 = vperm.xlu1 %1183, %v57_v21   ;;  %130 = vperm.xlu0 %1182, %v56_v22   ;;  %v36_v21 = vld [vmem:[%s1535_s1 + $0x50] sm:$0xff] }
  0x1f   :  { %1130 = vmatprep.subr.bf16.mxu0 %v1198_v24 }
  0x21   :  { %1131 = vmatpush3.bf16.msra.mxu0 %v1198_v24 }
  0x3d   :  { %428 = vadd.xlane.f32.xlu0 %v412_v27 }
  0x41   :  { %432 = vadd.xlane.f32.xlu0 %v414_v29  ;;  %v39_v29 = vld [vmem:[%s1535_s1 + $0x68] sm:$0xff] }
  0x42   :  { %430 = vadd.xlane.f32.xlu1 %v413_v30  ;;  %v38_v30 = vld [vmem:[%s1535_s1 + $0x60] sm:$0xff] }
  0x45   :  { %434 = vadd.xlane.f32.xlu0 %v415_v32 }
  0x46   :  { %436 = vadd.xlane.f32.xlu1 %v416_v33 }
  0x49   :  { %438 = vadd.xlane.f32.xlu0 %v417_v35 }
  0x4a   :  { %440 = vadd.xlane.f32.xlu1 %v418_v36 }
  0x4d   :  { %442 = vadd.xlane.f32.xlu0 %v419_v38 }
  0x4e   :  { %444 = vadd.xlane.f32.xlu1 %v420_v39  ;;  %v41_v39 = vld [vmem:[%s1535_s1 + $0x78] sm:$0xff] }
  0x51   :  { %446 = vadd.xlane.f32.xlu0 %v421_v41  ;;  %v40_v41 = vld [vmem:[%s1535_s1 + $0x70] sm:$0xff] }
  0x52   :  { %448 = vadd.xlane.f32.xlu1 %v422_v42 }
  0x55   :  { %450 = vadd.xlane.f32.xlu0 %v423_v44 }
  0x56   :  { %452 = vadd.xlane.f32.xlu1 %v424_v45 }
  0x59   :  { %454 = vadd.xlane.f32.xlu0 %v425_v47 }
  0x5a   :  { %456 = vadd.xlane.f32.xlu1 %v426_v48 }
  0x5d   :  { %458 = vadd.xlane.f32.xlu0 %v427_v49 }
  0x81   :  { %v71_v50 = vpop.permute.xlu1 %70  ;;  %v61_v51 = vpop.permute.xlu0 %60 }
  0x82   :  { %v140_v58 = vmul.f32 %v71_v50, %v28_v52  ;;  %v138_v59 = vmul.f32 %v61_v51, %v26_v53  ;;  %v396_v50 = vld [vmem:[#allocation4] sm:$0xff]  ;;  %v398_v53 = vld [vmem:[#allocation4 + $0x10] sm:$0xff] }
  0x85   :  { %v76_v56 = vpop.permute.xlu1 %75  ;;  %v66_v57 = vpop.permute.xlu0 %65 }
  0x86   :  { %v141_v60 = vmul.f32 %v76_v56, %v29_v54  ;;  %v139_v61 = vmul.f32 %v66_v57, %v27_v55  ;;  %v397_v54 = vld [vmem:[#allocation4 + $0x8] sm:$0xff] }
  0x88   :  { %v155_v0 = vpack.c.bf16 %v141_v60, %v140_v58  ;;  %v154_v1 = vpack.c.bf16 %v139_v61, %v138_v59  ;;  %v399_v59 = vld [vmem:[#allocation4 + $0x18] sm:$0xff]  ;;  %v400_v60 = vld [vmem:[#allocation4 + $0x20] sm:$0xff] }
  0x89   :  { %v86_v2 = vpop.permute.xlu1 %85  ;;  %v81_v3 = vpop.permute.xlu0 %80 }
  0x8a   :  { %v143_v4 = vmul.f32 %v86_v2, %v31_v62  ;;  %v142_v5 = vmul.f32 %v81_v3, %v30_v63  ;;  %1132 = vmatprep.mubr.bf16.mxu0 %v154_v1  ;;  %v401_v1 = vld [vmem:[#allocation4 + $0x28] sm:$0xff]  ;;  %v402_v3 = vld [vmem:[#allocation4 + $0x30] sm:$0xff] }
  0x8b   :  { %1133 = vmatmul.mubr.bf16.vlgmr.msra.gmra.mrb[0].mxu0 %v155_v0 }
  0x8c   :  { %v156_v8 = vpack.c.bf16 %v143_v4, %v142_v5 }
  0x8d   :  { %v96_v9 = vpop.permute.xlu1 %95  ;;  %v91_v10 = vpop.permute.xlu0 %90 }
  0x8e   :  { %v145_v11 = vmul.f32 %v96_v9, %v33_v6  ;;  %v144_v12 = vmul.f32 %v91_v10, %v32_v7  ;;  %1136 = vmatprep.mubr.bf16.mxu0 %v156_v8  ;;  %v403_v9 = vld [vmem:[#allocation4 + $0x38] sm:$0xff] }
  0x90   :  { %v157_v15 = vpack.c.bf16 %v145_v11, %v144_v12  ;;  %v404_v11 = vld [vmem:[#allocation4 + $0x40] sm:$0xff] }
  0x91   :  { %v106_v16 = vpop.permute.xlu1 %105  ;;  %v101_v17 = vpop.permute.xlu0 %100 }
  0x92   :  { %v147_v18 = vmul.f32 %v106_v16, %v35_v13  ;;  %v146_v19 = vmul.f32 %v101_v17, %v34_v14 }
  0x93   :  { %1137 = vmatmul.mubr.bf16.gmra.mrb[4].mxu0 %v157_v15 }
  0x94   :  { %v158_v22 = vpack.c.bf16 %v147_v18, %v146_v19  ;;  %v405_v19 = vld [vmem:[#allocation4 + $0x48] sm:$0xff] }
  0x95   :  { %v116_v23 = vpop.permute.xlu1 %115  ;;  %v111_v24 = vpop.permute.xlu0 %110 }
  0x96   :  { %v149_v25 = vmul.f32 %v116_v23, %v37_v20  ;;  %v148_v27 = vmul.f32 %v111_v24, %v36_v21  ;;  %1140 = vmatprep.mubr.bf16.mxu0 %v158_v22  ;;  %v406_v21 = vld [vmem:[#allocation4 + $0x50] sm:$0xff] }
  0x98   :  { %v159_v32 = vpack.c.bf16 %v149_v25, %v148_v27 }
  0x99   :  { %v126_v33 = vpop.permute.xlu1 %125  ;;  %v121_v35 = vpop.permute.xlu0 %120 }
  0x9a   :  { %v151_v36 = vmul.f32 %v126_v33, %v39_v29  ;;  %v150_v38 = vmul.f32 %v121_v35, %v38_v30 }
  0x9b   :  { %1141 = vmatmul.mubr.bf16.gmra.mrb[8].mxu0 %v159_v32  ;;  %v407_v32 = vld [vmem:[#allocation4 + $0x58] sm:$0xff] }
  0x9c   :  { %v160_v42 = vpack.c.bf16 %v151_v36, %v150_v38  ;;  %v408_v36 = vld [vmem:[#allocation4 + $0x60] sm:$0xff] }
  0x9d   :  { %v136_v44 = vpop.permute.xlu1 %135  ;;  %v131_v45 = vpop.permute.xlu0 %130 }
  0x9e   :  { %v153_v47 = vmul.f32 %v136_v44, %v41_v39  ;;  %v152_v48 = vmul.f32 %v131_v45, %v40_v41  ;;  %1144 = vmatprep.mubr.bf16.mxu0 %v160_v42 }
  0xa0   :  { %v161_v49 = vpack.c.bf16 %v153_v47, %v152_v48  ;;  %v409_v48 = vld [vmem:[#allocation4 + $0x68] sm:$0xff] }
  0xa3   :  { %1145 = vmatmul.mubr.bf16.gmra.mrb[12].mxu0 %v161_v49 }
  0xca   :  { %v429_v51 = vpop.xlane.xlu0 %428 }
  0xcb   :  { %v460_v52 = vadd.f32 %v429_v51, %v396_v50  ;;  %v410_v51 = vld [vmem:[#allocation4 + $0x70] sm:$0xff] }
  0xcd   :  { %477 = vst.msk [vmem:[#allocation4] sm:$0xff] %vm363_vm0, %v460_v52 }
  0xce   :  { %v433_v55 = vpop.xlane.xlu0 %432 }
  0xcf   :  { %v462_v56 = vadd.f32 %v433_v55, %v398_v53  ;;  %v431_v57 = vpop.xlane.xlu1 %430 }
  0xd0   :  { %v461_v58 = vadd.f32 %v431_v57, %v397_v54 }
  0xd1   :  { %479 = vst.msk [vmem:[#allocation4 + $0x10] sm:$0xff] %vm363_vm0, %v462_v56 }
  0xd2   :  { %478 = vst.msk [vmem:[#allocation4 + $0x8] sm:$0xff] %vm363_vm0, %v461_v58  ;;  %v435_v61 = vpop.xlane.xlu0 %434 }
  0xd3   :  { %v463_v62 = vadd.f32 %v435_v61, %v399_v59  ;;  %v437_v63 = vpop.xlane.xlu1 %436 }
  0xd4   :  { %v464_v0 = vadd.f32 %v437_v63, %v400_v60  ;;  %v701_v2 = vld [vmem:[#allocation4] sm:$0xff]  ;;  %v411_v60 = vld [vmem:[#allocation4 + $0x78] sm:$0xff] }
  0xd5   :  { %480 = vst.msk [vmem:[#allocation4 + $0x18] sm:$0xff] %vm363_vm0, %v463_v62  ;;  %v717_v4 = vmax.f32 %v701_v2, 1.0 }
  0xd6   :  { %481 = vst.msk [vmem:[#allocation4 + $0x20] sm:$0xff] %vm363_vm0, %v464_v0  ;;  %v439_v5 = vpop.xlane.xlu0 %438 }
  0xd7   :  { %v465_v6 = vadd.f32 %v439_v5, %v401_v1  ;;  %v441_v7 = vpop.xlane.xlu1 %440  ;;  %1207 = vrsqrt.f32 %v717_v4 }
  0xd8   :  { %v466_v8 = vadd.f32 %v441_v7, %v402_v3  ;;  %v703_v10 = vld [vmem:[#allocation4 + $0x10] sm:$0xff] }
  0xd9   :  { %482 = vst.msk [vmem:[#allocation4 + $0x28] sm:$0xff] %vm363_vm0, %v465_v6  ;;  %v719_v12 = vmax.f32 %v703_v10, 1.0  ;;  %v702_v13 = vld [vmem:[#allocation4 + $0x8] sm:$0xff] }
  0xda   :  { %483 = vst.msk [vmem:[#allocation4 + $0x30] sm:$0xff] %vm363_vm0, %v466_v8  ;;  %v443_v14 = vpop.xlane.xlu0 %442  ;;  %v718_v15 = vmax.f32 %v702_v13, 1.0 }
  0xdb   :  { %v467_v16 = vadd.f32 %v443_v14, %v403_v9  ;;  %v445_v17 = vpop.xlane.xlu1 %444  ;;  %1209 = vrsqrt.f32 %v719_v12 }
  0xdc   :  { %v468_v18 = vadd.f32 %v445_v17, %v404_v11  ;;  %1211 = vrsqrt.f32 %v718_v15  ;;  %v704_v20 = vld [vmem:[#allocation4 + $0x18] sm:$0xff] }
  0xdd   :  { %484 = vst.msk [vmem:[#allocation4 + $0x38] sm:$0xff] %vm363_vm0, %v467_v16  ;;  %v720_v22 = vmax.f32 %v704_v20, 1.0  ;;  %v705_v23 = vld [vmem:[#allocation4 + $0x20] sm:$0xff] }
  0xde   :  { %485 = vst.msk [vmem:[#allocation4 + $0x40] sm:$0xff] %vm363_vm0, %v468_v18  ;;  %v447_v24 = vpop.xlane.xlu0 %446  ;;  %v721_v25 = vmax.f32 %v705_v23, 1.0 }
  0xdf   :  { %v469_v27 = vadd.f32 %v447_v24, %v405_v19  ;;  %v449_v29 = vpop.xlane.xlu1 %448  ;;  %1213 = vrsqrt.f32 %v720_v22 }
  0xe0   :  { %v470_v30 = vadd.f32 %v449_v29, %v406_v21  ;;  %1215 = vrsqrt.f32 %v721_v25  ;;  %v706_v33 = vld [vmem:[#allocation4 + $0x28] sm:$0xff] }
  0xe1   :  { %v1208_v35 = vpop.eup %1207  ;;  %486 = vst.msk [vmem:[#allocation4 + $0x48] sm:$0xff] %vm363_vm0, %v469_v27  ;;  %v722_v38 = vmax.f32 %v706_v33, 1.0  ;;  %v707_v39 = vld [vmem:[#allocation4 + $0x30] sm:$0xff] }
  0xe2   :  { %487 = vst.msk [vmem:[#allocation4 + $0x50] sm:$0xff] %vm363_vm0, %v470_v30  ;;  %767 = vperm.xlu1 %1183, %v1208_v35   ;;  %v451_v41 = vpop.xlane.xlu0 %450  ;;  %v723_v42 = vmax.f32 %v707_v39, 1.0 }
  0xe3   :  { %v471_v44 = vadd.f32 %v451_v41, %v407_v32  ;;  %v453_v45 = vpop.xlane.xlu1 %452  ;;  %1217 = vrsqrt.f32 %v722_v38 }
  0xe4   :  { %v472_v47 = vadd.f32 %v453_v45, %v408_v36  ;;  %1219 = vrsqrt.f32 %v723_v42  ;;  %v708_v49 = vld [vmem:[#allocation4 + $0x38] sm:$0xff] }
  0xe5   :  { %v1210_v50 = vpop.eup %1209  ;;  %488 = vst.msk [vmem:[#allocation4 + $0x58] sm:$0xff] %vm363_vm0, %v471_v44  ;;  %v724_v52 = vmax.f32 %v708_v49, 1.0  ;;  %v709_v53 = vld [vmem:[#allocation4 + $0x40] sm:$0xff] }
  0xe6   :  { %v1212_v54 = vpop.eup %1211  ;;  %489 = vst.msk [vmem:[#allocation4 + $0x60] sm:$0xff] %vm363_vm0, %v472_v47  ;;  %777 = vperm.xlu1 %1183, %v1210_v50   ;;  %v455_v55 = vpop.xlane.xlu0 %454  ;;  %v725_v56 = vmax.f32 %v709_v53, 1.0 }
  0xe7   :  { %v473_v57 = vadd.f32 %v455_v55, %v409_v48  ;;  %v457_v58 = vpop.xlane.xlu1 %456  ;;  %772 = vperm.xlu0 %1182, %v1212_v54   ;;  %1221 = vrsqrt.f32 %v724_v52 }
  0xe8   :  { %v474_v59 = vadd.f32 %v457_v58, %v410_v51  ;;  %1223 = vrsqrt.f32 %v725_v56  ;;  %v710_v61 = vld [vmem:[#allocation4 + $0x48] sm:$0xff] }
  0xe9   :  { %v1214_v62 = vpop.eup %1213  ;;  %490 = vst.msk [vmem:[#allocation4 + $0x68] sm:$0xff] %vm363_vm0, %v473_v57  ;;  %v726_v63 = vmax.f32 %v710_v61, 1.0  ;;  %v711_v0 = vld [vmem:[#allocation4 + $0x50] sm:$0xff] }
  0xea   :  { %v1216_v1 = vpop.eup %1215  ;;  %491 = vst.msk [vmem:[#allocation4 + $0x70] sm:$0xff] %vm363_vm0, %v474_v59  ;;  %782 = vperm.xlu1 %1183, %v1214_v62   ;;  %v459_v2 = vpop.xlane.xlu0 %458  ;;  %v727_v3 = vmax.f32 %v711_v0, 1.0 }
  0xeb   :  { %v475_v4 = vadd.f32 %v459_v2, %v411_v60  ;;  %787 = vperm.xlu0 %1182, %v1216_v1   ;;  %1225 = vrsqrt.f32 %v726_v63 }
  0xec   :  { %1227 = vrsqrt.f32 %v727_v3  ;;  %v712_v5 = vld [vmem:[#allocation4 + $0x58] sm:$0xff] }
  0xed   :  { %v1218_v6 = vpop.eup %1217  ;;  %492 = vst.msk [vmem:[#allocation4 + $0x78] sm:$0xff] %vm363_vm0, %v475_v4  ;;  %v728_v7 = vmax.f32 %v712_v5, 1.0  ;;  %v713_v8 = vld [vmem:[#allocation4 + $0x60] sm:$0xff] }
  0xee   :  { %v1220_v9 = vpop.eup %1219  ;;  %792 = vperm.xlu1 %1183, %v1218_v6   ;;  %v729_v10 = vmax.f32 %v713_v8, 1.0 }
  0xef   :  { %797 = vperm.xlu0 %1182, %v1220_v9   ;;  %1229 = vrsqrt.f32 %v728_v7 }
  0xf0   :  { %1231 = vrsqrt.f32 %v729_v10  ;;  %v714_v11 = vld [vmem:[#allocation4 + $0x68] sm:$0xff] }
  0xf1   :  { %v1222_v12 = vpop.eup %1221  ;;  %v730_v13 = vmax.f32 %v714_v11, 1.0  ;;  %v715_v14 = vld [vmem:[#allocation4 + $0x70] sm:$0xff] }
  0xf2   :  { %v1224_v15 = vpop.eup %1223  ;;  %802 = vperm.xlu1 %1183, %v1222_v12   ;;  %v731_v16 = vmax.f32 %v715_v14, 1.0 }
  0xf3   :  { %807 = vperm.xlu0 %1182, %v1224_v15   ;;  %1233 = vrsqrt.f32 %v730_v13 }
  0xf4   :  { %1235 = vrsqrt.f32 %v731_v16  ;;  %v716_v17 = vld [vmem:[#allocation4 + $0x78] sm:$0xff] }
  0xf5   :  { %v1226_v18 = vpop.eup %1225  ;;  %v732_v19 = vmax.f32 %v716_v17, 1.0 }
  0xf6   :  { %v1228_v20 = vpop.eup %1227  ;;  %812 = vperm.xlu1 %1183, %v1226_v18  }
  0xf7   :  { %817 = vperm.xlu0 %1182, %v1228_v20   ;;  %1237 = vrsqrt.f32 %v732_v19 }
  0xf9   :  { %v1230_v21 = vpop.eup %1229 }
  0xfa   :  { %v1232_v22 = vpop.eup %1231  ;;  %822 = vperm.xlu1 %1183, %v1230_v21  }
  0xfb   :  { %827 = vperm.xlu0 %1182, %v1232_v22  }
  0xfd   :  { %v1234_v23 = vpop.eup %1233 }
  0xfe   :  { %v1236_v24 = vpop.eup %1235  ;;  %832 = vperm.xlu1 %1183, %v1234_v23  }
  0xff   :  { %837 = vperm.xlu0 %1182, %v1236_v24  }
 0x101   :  { %v1238_v25 = vpop.eup %1237 }
 0x102   :  { %842 = vperm.xlu1 %1183, %v1238_v25  }
 0x15e   :  { %v1134_v27 = vpop.f32.mrb[0].mxu0 }
 0x15f   :  { %v260_v29 = vpop.f32.mrb[1].mxu0 }
 0x160   :  { %v1135_v30 = vpop.f32.mrb[2].mxu0 }
 0x161   :  { %v324_v32 = vpack.c.bf16 %v1135_v30, %v1134_v27  ;;  %v263_v33 = vpop.f32.mrb[3].mxu0  ;;  %v768_v57 = vpop.permute.xlu1 %767 }
 0x162   :  { %v323_v35 = vpack.c.bf16 %v263_v33, %v260_v29 }
 0x164   :  { %1148 = vmatprep.subr.bf16.mxu1 %v323_v35 }
 0x165   :  { %1149 = vmatpush3.bf16.msra.mxu1 %v323_v35  ;;  %v778_v58 = vpop.permute.xlu1 %777 }
 0x166   :  { %v1138_v36 = vpop.f32.mrb[4].mxu0  ;;  %1150 = vmatprep.subr.bf16.mxu1 %v324_v32  ;;  %v773_v59 = vpop.permute.xlu0 %772 }
 0x167   :  { %v276_v38 = vpop.f32.mrb[5].mxu0 }
 0x168   :  { %v1139_v39 = vpop.f32.mrb[6].mxu0 }
 0x169   :  { %v326_v41 = vpack.c.bf16 %v1139_v39, %v1138_v36  ;;  %v279_v42 = vpop.f32.mrb[7].mxu0  ;;  %1151 = vmatpush3.bf16.msra.mxu1 %v324_v32  ;;  %v783_v60 = vpop.permute.xlu1 %782 }
 0x16a   :  { %v325_v44 = vpack.c.bf16 %v279_v42, %v276_v38  ;;  %v788_v61 = vpop.permute.xlu0 %787 }
 0x16c   :  { %1152 = vmatprep.subr.bf16.mxu1 %v325_v44 }
 0x16d   :  { %1153 = vmatpush3.bf16.msra.mxu1 %v325_v44  ;;  %v793_v62 = vpop.permute.xlu1 %792 }
 0x16e   :  { %v1142_v45 = vpop.f32.mrb[8].mxu0  ;;  %1154 = vmatprep.subr.bf16.mxu1 %v326_v41  ;;  %v798_v63 = vpop.permute.xlu0 %797 }
 0x16f   :  { %v292_v26 = vpop.f32.mrb[9].mxu0 }
 0x170   :  { %v1143_v47 = vpop.f32.mrb[10].mxu0 }
 0x171   :  { %v328_v48 = vpack.c.bf16 %v1143_v47, %v1142_v45  ;;  %v295_v49 = vpop.f32.mrb[11].mxu0  ;;  %1155 = vmatpush3.bf16.msra.mxu1 %v326_v41 }
 0x172   :  { %v327_v50 = vpack.c.bf16 %v295_v49, %v292_v26  ;;  %v808_v6 = vpop.permute.xlu0 %807 }
 0x174   :  { %1156 = vmatprep.subr.bf16.mxu1 %v327_v50 }
 0x175   :  { %1157 = vmatpush3.bf16.msra.mxu1 %v327_v50 }
 0x176   :  { %v1146_v51 = vpop.f32.mrb[12].mxu0  ;;  %1158 = vmatprep.subr.bf16.mxu1 %v328_v48  ;;  %v818_v23 = vpop.permute.xlu0 %817 }
 0x177   :  { %v308_v52 = vpop.f32.mrb[13].mxu0 }
 0x178   :  { %v1147_v53 = vpop.f32.mrb[14].mxu0 }
 0x179   :  { %v330_v54 = vpack.c.bf16 %v1147_v53, %v1146_v51  ;;  %v311_v55 = vpop.f32.mrb[15].mxu0  ;;  %1159 = vmatpush3.bf16.msra.mxu1 %v328_v48 }
 0x17a   :  { %v329_v56 = vpack.c.bf16 %v311_v55, %v308_v52  ;;  %v828_v44 = vpop.permute.xlu0 %827 }
 0x17c   :  { %1160 = vmatprep.subr.bf16.mxu1 %v329_v56 }
 0x17d   :  { %1161 = vmatpush3.bf16.msra.mxu1 %v329_v56 }
 0x17e   :  { %1162 = vmatprep.subr.bf16.mxu1 %v330_v54 }
 0x181   :  { %1163 = vmatpush3.bf16.msra.mxu1 %v330_v54 }
 0x184   :  { %1165 = vmatmul.mubr.bf16.vlgmr.msra.gmra.mrb[0].mxu1 %v1368_v28 }
 0x185   :  { %1168 = vmatprep.mubr.bf16.mxu1 %v1375_v31  ;;  %v1490_v31 = vld [vmem:[%s1536_s3] ss:$0 sm:$0xff] }
 0x18c   :  { %1169 = vmatmul.mubr.bf16.gmra.mrb[4].mxu1 %v1382_v34 }
 0x18d   :  { %1172 = vmatprep.mubr.bf16.mxu1 %v1389_v37 }
 0x194   :  { %1173 = vmatmul.mubr.bf16.gmra.mrb[8].mxu1 %v1396_v40  ;;  %v803_v40 = vpop.permute.xlu1 %802 }
 0x195   :  { %1176 = vmatprep.mubr.bf16.mxu1 %v1403_v43 }
 0x198   :  { %v813_v10 = vpop.permute.xlu1 %812 }
 0x19c   :  { %1177 = vmatmul.mubr.bf16.gmra.mrb[12].mxu1 %v1410_v46  ;;  %v823_v29 = vpop.permute.xlu1 %822 }
 0x1a0   :  { %v833_v51 = vpop.permute.xlu1 %832 }
 0x257   :  { %v1166_v28 = vpop.f32.mrb[0].mxu1 }
 0x258   :  { %v847_v34 = vmul.f32 %v1166_v28, %v778_v58  ;;  %v603_v37 = vpop.f32.mrb[1].mxu1  ;;  %v838_v58 = vpop.permute.xlu0 %837 }
 0x259   :  { %v845_v0 = vmul.f32 %v768_v57, %v603_v37  ;;  %v1167_v43 = vpop.f32.mrb[2].mxu1 }
 0x25a   :  { %v870_v46 = vadd.f32 %v1490_v31, %v847_v34  ;;  %v848_v1 = vmul.f32 %v1167_v43, %v783_v60  ;;  %v606_v2 = vpop.f32.mrb[3].mxu1  ;;  %v843_v34 = vpop.permute.xlu1 %842 }
 0x25b   :  { %v868_v3 = vadd.f32 %v1490_v31, %v845_v0  ;;  %v846_v4 = vmul.f32 %v773_v59, %v606_v2 }
 0x25c   :  { %v871_v5 = vadd.f32 %v1490_v31, %v848_v1  ;;  %v886_v8 = vmax.f32 %v870_v46, 0.0 }
 0x25d   :  { %v869_v7 = vadd.f32 %v1490_v31, %v846_v4  ;;  %v884_v11 = vmax.f32 %v868_v3, 0.0 }
 0x25e   :  { %v887_v9 = vmax.f32 %v871_v5, 0.0 }
 0x25f   :  { %v885_v12 = vmax.f32 %v869_v7, 0.0  ;;  %v1170_v13 = vpop.f32.mrb[4].mxu1 }
 0x260   :  { %v1045_v14 = vpack.c.bf16 %v887_v9, %v886_v8  ;;  %v851_v15 = vmul.f32 %v1170_v13, %v798_v63  ;;  %v619_v16 = vpop.f32.mrb[5].mxu1 }
 0x261   :  { %v1040_v17 = vpack.c.bf16 %v885_v12, %v884_v11  ;;  %v849_v18 = vmul.f32 %v788_v61, %v619_v16  ;;  %v1171_v19 = vpop.f32.mrb[6].mxu1 }
 0x262   :  { %1077 = vst [vmem:[%s1537_s5 + $0x8] sm:$0xff] %v1045_v14   ;;  %v874_v20 = vadd.f32 %v1490_v31, %v851_v15  ;;  %v852_v21 = vmul.f32 %v1171_v19, %v803_v40  ;;  %v622_v22 = vpop.f32.mrb[7].mxu1 }
 0x263   :  { %1041 = vst [vmem:[%s1537_s5] sm:$0xff] %v1040_v17   ;;  %v872_v24 = vadd.f32 %v1490_v31, %v849_v18  ;;  %v850_v25 = vmul.f32 %v793_v62, %v622_v22 }
 0x264   :  { %v875_v27 = vadd.f32 %v1490_v31, %v852_v21  ;;  %v890_v32 = vmax.f32 %v874_v20, 0.0 }
 0x265   :  { %v873_v30 = vadd.f32 %v1490_v31, %v850_v25  ;;  %v888_v35 = vmax.f32 %v872_v24, 0.0 }
 0x266   :  { %v891_v33 = vmax.f32 %v875_v27, 0.0 }
 0x267   :  { %v889_v36 = vmax.f32 %v873_v30, 0.0  ;;  %v1174_v38 = vpop.f32.mrb[8].mxu1 }
 0x268   :  { %v1055_v39 = vpack.c.bf16 %v891_v33, %v890_v32  ;;  %v855_v41 = vmul.f32 %v1174_v38, %v818_v23  ;;  %v635_v42 = vpop.f32.mrb[9].mxu1 }
 0x269   :  { %v1050_v45 = vpack.c.bf16 %v889_v36, %v888_v35  ;;  %v853_v26 = vmul.f32 %v808_v6, %v635_v42  ;;  %v1175_v47 = vpop.f32.mrb[10].mxu1 }
 0x26a   :  { %1079 = vst [vmem:[%s1537_s5 + $0x18] sm:$0xff] %v1055_v39   ;;  %v878_v48 = vadd.f32 %v1490_v31, %v855_v41  ;;  %v856_v49 = vmul.f32 %v1175_v47, %v823_v29  ;;  %v638_v50 = vpop.f32.mrb[11].mxu1 }
 0x26b   :  { %1078 = vst [vmem:[%s1537_s5 + $0x10] sm:$0xff] %v1050_v45   ;;  %v876_v52 = vadd.f32 %v1490_v31, %v853_v26  ;;  %v854_v53 = vmul.f32 %v813_v10, %v638_v50 }
 0x26c   :  { %v879_v54 = vadd.f32 %v1490_v31, %v856_v49  ;;  %v894_v56 = vmax.f32 %v878_v48, 0.0 }
 0x26d   :  { %v877_v55 = vadd.f32 %v1490_v31, %v854_v53  ;;  %v892_v59 = vmax.f32 %v876_v52, 0.0 }
 0x26e   :  { %v895_v57 = vmax.f32 %v879_v54, 0.0 }
 0x26f   :  { %v893_v60 = vmax.f32 %v877_v55, 0.0  ;;  %v1178_v61 = vpop.f32.mrb[12].mxu1 }
 0x270   :  { %v1065_v62 = vpack.c.bf16 %v895_v57, %v894_v56  ;;  %v859_v63 = vmul.f32 %v1178_v61, %v838_v58  ;;  %v651_v28 = vpop.f32.mrb[13].mxu1 }
 0x271   :  { %v1060_v37 = vpack.c.bf16 %v893_v60, %v892_v59  ;;  %v857_v40 = vmul.f32 %v828_v44, %v651_v28  ;;  %v1179_v0 = vpop.f32.mrb[14].mxu1 }
 0x272   :  { %1081 = vst [vmem:[%s1537_s5 + $0x28] sm:$0xff] %v1065_v62   ;;  %v882_v43 = vadd.f32 %v1490_v31, %v859_v63  ;;  %v860_v46 = vmul.f32 %v1179_v0, %v843_v34  ;;  %v654_v1 = vpop.f32.mrb[15].mxu1 }
 0x273   :  { %1080 = vst [vmem:[%s1537_s5 + $0x20] sm:$0xff] %v1060_v37   ;;  %v880_v2 = vadd.f32 %v1490_v31, %v857_v40  ;;  %v858_v3 = vmul.f32 %v833_v51, %v654_v1 }
 0x274   :  { %v883_v4 = vadd.f32 %v1490_v31, %v860_v46  ;;  %v898_v6 = vmax.f32 %v882_v43, 0.0 }
 0x275   :  { %v881_v5 = vadd.f32 %v1490_v31, %v858_v3  ;;  %v896_v8 = vmax.f32 %v880_v2, 0.0 }
 0x276   :  { %v899_v7 = vmax.f32 %v883_v4, 0.0 }
 0x277   :  { %v897_v9 = vmax.f32 %v881_v5, 0.0 }
 0x278   :  { %v1075_v10 = vpack.c.bf16 %v899_v7, %v898_v6 }
 0x279   :  { %v1070_v11 = vpack.c.bf16 %v897_v9, %v896_v8 }
 0x27a   :  { %1083 = vst [vmem:[%s1537_s5 + $0x38] sm:$0xff] %v1075_v10  }
 0x27b   :  { %1082 = vst [vmem:[%s1537_s5 + $0x30] sm:$0xff] %v1070_v11  }

// kernel: stochastic_two_layer_gcn.3
= control target key start
LH: loop header
LB: loop body
LE: loop exit
PB: predicated region body
PF: predicated region fallthrough
CT: control target
= control target key end

     0   :  { %v1151_v0 = vmov 0   ;;  %vm379_vm0 = vcmask 7168   ;;  %v1152_v25 = vmov 0.0   ;;  %s1444_s0 = inlined_call_operand.vmem [shape: f32[128,1], index: 0, kind: input, shape index: {}]   ;;  %s1445_s2 = inlined_call_operand.vmem [shape: bf16[128,128], index: 2, kind: input, shape index: {}]   ;;  %s1446_s4 = inlined_call_operand.vmem [shape: bf16[128,128], index: 4, kind: input, shape index: {}]   ;;  %s1447_s1 = inlined_call_operand.vmem [shape: bf16[128,128], index: 1, kind: input, shape index: {}]   ;;  %s1448_s3 = inlined_call_operand.vmem [shape: f32[1,128], index: 3, kind: input, shape index: {}]   ;;  %s1449_s5 = inlined_call_operand.vmem [shape: f32[128,128], index: 5, kind: output, shape index: {}]  }
   0x1   :  { %1095 = vset.pattern.permute.xlu1 %v1151_v0  ;;  %1094 = vset.pattern.permute.xlu0 %v1151_v0  ;;  %v60_v1 = vld [vmem:[%s1444_s0 + $0x10] sm:$0xff]  ;;  %v58_v2 = vld [vmem:[%s1444_s0] sm:$0xff]  ;;  %v61_v3 = vld [vmem:[%s1444_s0 + $0x18] sm:$0xff]  ;;  %380 = vst.msk [vmem:[#allocation4] sm:$0xff] %vm379_vm0, %v1152_v25 }
   0x2   :  { %86 = vperm.xlu1 %1095, %v60_v1   ;;  %76 = vperm.xlu0 %1094, %v58_v2   ;;  %v59_v4 = vld [vmem:[%s1444_s0 + $0x8] sm:$0xff]  ;;  %v62_v6 = vld [vmem:[%s1444_s0 + $0x20] sm:$0xff]  ;;  %v65_v7 = vld [vmem:[%s1444_s0 + $0x38] sm:$0xff]  ;;  %381 = vst.msk [vmem:[#allocation4 + $0x8] sm:$0xff] %vm379_vm0, %v1152_v25 }
   0x3   :  { %v63_v5 = vld [vmem:[%s1444_s0 + $0x28] sm:$0xff]  ;;  %v1103_v8 = vld [vmem:[%s1445_s2] sm:$0xff]   ;;  %v64_v10 = vld [vmem:[%s1444_s0 + $0x30] sm:$0xff]  ;;  %382 = vst.msk [vmem:[#allocation4 + $0x10] sm:$0xff] %vm379_vm0, %v1152_v25 }
   0x4   :  { %v1104_v9 = vld [vmem:[%s1445_s2 + $0x8] sm:$0xff]   ;;  %1028 = vmatprep.subr.bf16.mxu0 %v1103_v8  ;;  %v1105_v11 = vld [vmem:[%s1445_s2 + $0x10] sm:$0xff]   ;;  %v66_v13 = vld [vmem:[%s1444_s0 + $0x40] sm:$0xff]  ;;  %383 = vst.msk [vmem:[#allocation4 + $0x18] sm:$0xff] %vm379_vm0, %v1152_v25 }
   0x5   :  { %1029 = vmatpush3.bf16.msra.mxu0 %v1103_v8  ;;  %v67_v12 = vld [vmem:[%s1444_s0 + $0x48] sm:$0xff]  ;;  %v1106_v14 = vld [vmem:[%s1445_s2 + $0x18] sm:$0xff]   ;;  %v68_v16 = vld [vmem:[%s1444_s0 + $0x50] sm:$0xff]  ;;  %384 = vst.msk [vmem:[#allocation4 + $0x20] sm:$0xff] %vm379_vm0, %v1152_v25 }
   0x6   :  { %91 = vperm.xlu1 %1095, %v61_v3   ;;  %81 = vperm.xlu0 %1094, %v59_v4   ;;  %v69_v15 = vld [vmem:[%s1444_s0 + $0x58] sm:$0xff]  ;;  %v1107_v17 = vld [vmem:[%s1445_s2 + $0x20] sm:$0xff]   ;;  %v71_v18 = vld [vmem:[%s1444_s0 + $0x68] sm:$0xff]  ;;  %385 = vst.msk [vmem:[#allocation4 + $0x28] sm:$0xff] %vm379_vm0, %v1152_v25 }
   0x7   :  { %1030 = vmatprep.subr.bf16.mxu0 %v1104_v9  ;;  %v70_v19 = vld [vmem:[%s1444_s0 + $0x60] sm:$0xff]  ;;  %v1108_v20 = vld [vmem:[%s1445_s2 + $0x28] sm:$0xff]   ;;  %v73_v21 = vld [vmem:[%s1444_s0 + $0x78] sm:$0xff]  ;;  %386 = vst.msk [vmem:[#allocation4 + $0x30] sm:$0xff] %vm379_vm0, %v1152_v25 }
   0x8   :  { %v72_v22 = vld [vmem:[%s1444_s0 + $0x70] sm:$0xff]  ;;  %v1110_v24 = vld [vmem:[%s1445_s2 + $0x38] sm:$0xff]   ;;  %387 = vst.msk [vmem:[#allocation4 + $0x38] sm:$0xff] %vm379_vm0, %v1152_v25  ;;  %388 = vst.msk [vmem:[#allocation4 + $0x40] sm:$0xff] %vm379_vm0, %v1152_v25 }
   0x9   :  { %1031 = vmatpush3.bf16.msra.mxu0 %v1104_v9  ;;  %v1109_v23 = vld [vmem:[%s1445_s2 + $0x30] sm:$0xff]   ;;  %389 = vst.msk [vmem:[#allocation4 + $0x48] sm:$0xff] %vm379_vm0, %v1152_v25  ;;  %390 = vst.msk [vmem:[#allocation4 + $0x50] sm:$0xff] %vm379_vm0, %v1152_v25  ;;  %v1274_v26 = vld [vmem:[%s1446_s4] sm:$0xff]  }
   0xa   :  { %101 = vperm.xlu1 %1095, %v63_v5   ;;  %96 = vperm.xlu0 %1094, %v62_v6   ;;  %391 = vst.msk [vmem:[#allocation4 + $0x58] sm:$0xff] %vm379_vm0, %v1152_v25  ;;  %392 = vst.msk [vmem:[#allocation4 + $0x60] sm:$0xff] %vm379_vm0, %v1152_v25  ;;  %v428_v27 = vunpack.c.l.bf16 %v1274_v26  ;;  %v1280_v28 = vld [vmem:[%s1446_s4 + $0x8] sm:$0xff]   ;;  %v429_v30 = vunpack.c.h.bf16 %v1274_v26  ;;  %v1287_v31 = vld [vmem:[%s1446_s4 + $0x10] sm:$0xff]  }
   0xb   :  { %1032 = vmatprep.subr.bf16.mxu0 %v1105_v11  ;;  %393 = vst.msk [vmem:[#allocation4 + $0x68] sm:$0xff] %vm379_vm0, %v1152_v25  ;;  %394 = vst.msk [vmem:[#allocation4 + $0x70] sm:$0xff] %vm379_vm0, %v1152_v25  ;;  %v430_v29 = vunpack.c.l.bf16 %v1280_v28  ;;  %v431_v32 = vunpack.c.h.bf16 %v1280_v28  ;;  %v432_v33 = vunpack.c.l.bf16 %v1287_v31  ;;  %v1294_v34 = vld [vmem:[%s1446_s4 + $0x18] sm:$0xff]   ;;  %v433_v35 = vunpack.c.h.bf16 %v1287_v31  ;;  %v1301_v37 = vld [vmem:[%s1446_s4 + $0x20] sm:$0xff]   ;;  %1076 = vmatprep.mubr.bf16.mxu1 %v1274_v26 }
   0xc   :  { %395 = vst.msk [vmem:[#allocation4 + $0x78] sm:$0xff] %vm379_vm0, %v1152_v25  ;;  %v434_v36 = vunpack.c.l.bf16 %v1294_v34  ;;  %v435_v38 = vunpack.c.h.bf16 %v1294_v34  ;;  %v436_v39 = vunpack.c.l.bf16 %v1301_v37  ;;  %v1308_v40 = vld [vmem:[%s1446_s4 + $0x28] sm:$0xff]   ;;  %v437_v41 = vunpack.c.h.bf16 %v1301_v37  ;;  %v1315_v43 = vld [vmem:[%s1446_s4 + $0x30] sm:$0xff]   ;;  %v1322_v46 = vld [vmem:[%s1446_s4 + $0x38] sm:$0xff]  }
   0xd   :  { %1033 = vmatpush3.bf16.msra.mxu0 %v1105_v11  ;;  %v438_v42 = vunpack.c.l.bf16 %v1308_v40  ;;  %v439_v44 = vunpack.c.h.bf16 %v1308_v40  ;;  %v440_v45 = vunpack.c.l.bf16 %v1315_v43  ;;  %v441_v47 = vunpack.c.h.bf16 %v1315_v43  ;;  %v989_v50 = vld [vmem:[%s1447_s1 + $0x8] sm:$0xff]   ;;  %v958_v51 = vld [vmem:[%s1447_s1] sm:$0xff]   ;;  %v990_v58 = vld [vmem:[%s1447_s1 + $0x10] sm:$0xff]  }
   0xe   :  { %111 = vperm.xlu1 %1095, %v65_v7   ;;  %106 = vperm.xlu0 %1094, %v64_v10   ;;  %v442_v48 = vunpack.c.l.bf16 %v1322_v46  ;;  %v443_v49 = vunpack.c.h.bf16 %v1322_v46  ;;  %v963_v54 = vunpack.c.l.bf16 %v989_v50  ;;  %v959_v55 = vunpack.c.l.bf16 %v958_v51  ;;  %v991_v3 = vld [vmem:[%s1447_s1 + $0x18] sm:$0xff]  }
   0xf   :  { %1034 = vmatprep.subr.bf16.mxu0 %v1106_v14  ;;  %v964_v56 = vunpack.c.h.bf16 %v989_v50  ;;  %v960_v57 = vunpack.c.h.bf16 %v958_v51  ;;  %v968_v61 = vunpack.c.h.bf16 %v990_v58  ;;  %v967_v62 = vunpack.c.l.bf16 %v990_v58  ;;  %v412_v58 = vld [vmem:[#allocation4] sm:$0xff] }
  0x10   :  { %v972_v10 = vunpack.c.h.bf16 %v991_v3  ;;  %v971_v11 = vunpack.c.l.bf16 %v991_v3  ;;  %v415_v3 = vld [vmem:[#allocation4 + $0x18] sm:$0xff] }
  0x11   :  { %1035 = vmatpush3.bf16.msra.mxu0 %v1106_v14 }
  0x12   :  { %121 = vperm.xlu1 %1095, %v67_v12   ;;  %116 = vperm.xlu0 %1094, %v66_v13   ;;  %v992_v12 = vld [vmem:[%s1447_s1 + $0x20] sm:$0xff]  }
  0x13   :  { %1036 = vmatprep.subr.bf16.mxu0 %v1107_v17 }
  0x15   :  { %1037 = vmatpush3.bf16.msra.mxu0 %v1107_v17 }
  0x16   :  { %131 = vperm.xlu1 %1095, %v69_v15   ;;  %126 = vperm.xlu0 %1094, %v68_v16  }
  0x17   :  { %1038 = vmatprep.subr.bf16.mxu0 %v1108_v20 }
  0x19   :  { %1039 = vmatpush3.bf16.msra.mxu0 %v1108_v20  ;;  %v993_v20 = vld [vmem:[%s1447_s1 + $0x28] sm:$0xff]  }
  0x1a   :  { %141 = vperm.xlu1 %1095, %v71_v18   ;;  %136 = vperm.xlu0 %1094, %v70_v19   ;;  %v976_v18 = vunpack.c.h.bf16 %v992_v12  ;;  %v975_v19 = vunpack.c.l.bf16 %v992_v12 }
  0x1b   :  { %1040 = vmatprep.subr.bf16.mxu0 %v1109_v23 }
  0x1d   :  { %1041 = vmatpush3.bf16.msra.mxu0 %v1109_v23 }
  0x1e   :  { %151 = vperm.xlu1 %1095, %v73_v21   ;;  %146 = vperm.xlu0 %1094, %v72_v22  }
  0x1f   :  { %1042 = vmatprep.subr.bf16.mxu0 %v1110_v24 }
  0x21   :  { %1043 = vmatpush3.bf16.msra.mxu0 %v1110_v24 }
  0x3d   :  { %444 = vadd.xlane.f32.xlu0 %v428_v27  ;;  %v980_v27 = vunpack.c.h.bf16 %v993_v20 }
  0x41   :  { %448 = vadd.xlane.f32.xlu0 %v430_v29  ;;  %v979_v29 = vunpack.c.l.bf16 %v993_v20 }
  0x42   :  { %446 = vadd.xlane.f32.xlu1 %v429_v30  ;;  %v994_v30 = vld [vmem:[%s1447_s1 + $0x30] sm:$0xff]  }
  0x45   :  { %450 = vadd.xlane.f32.xlu0 %v431_v32 }
  0x46   :  { %452 = vadd.xlane.f32.xlu1 %v432_v33 }
  0x49   :  { %454 = vadd.xlane.f32.xlu0 %v433_v35 }
  0x4a   :  { %456 = vadd.xlane.f32.xlu1 %v434_v36 }
  0x4d   :  { %458 = vadd.xlane.f32.xlu0 %v435_v38 }
  0x4e   :  { %460 = vadd.xlane.f32.xlu1 %v436_v39  ;;  %v984_v39 = vunpack.c.h.bf16 %v994_v30 }
  0x51   :  { %462 = vadd.xlane.f32.xlu0 %v437_v41  ;;  %v983_v41 = vunpack.c.l.bf16 %v994_v30 }
  0x52   :  { %464 = vadd.xlane.f32.xlu1 %v438_v42  ;;  %v995_v42 = vld [vmem:[%s1447_s1 + $0x38] sm:$0xff]  }
  0x53   :  { %v988_v50 = vunpack.c.h.bf16 %v995_v42  ;;  %v987_v51 = vunpack.c.l.bf16 %v995_v42 }
  0x55   :  { %466 = vadd.xlane.f32.xlu0 %v439_v44 }
  0x56   :  { %468 = vadd.xlane.f32.xlu1 %v440_v45 }
  0x59   :  { %470 = vadd.xlane.f32.xlu0 %v441_v47 }
  0x5a   :  { %472 = vadd.xlane.f32.xlu1 %v442_v48 }
  0x5d   :  { %474 = vadd.xlane.f32.xlu0 %v443_v49 }
  0x81   :  { %v87_v52 = vpop.permute.xlu1 %86  ;;  %v77_v53 = vpop.permute.xlu0 %76 }
  0x82   :  { %v156_v63 = vmul.f32 %v963_v54, %v87_v52  ;;  %v154_v0 = vmul.f32 %v959_v55, %v77_v53 }
  0x85   :  { %v92_v59 = vpop.permute.xlu1 %91  ;;  %v82_v60 = vpop.permute.xlu0 %81 }
  0x86   :  { %v157_v1 = vmul.f32 %v964_v56, %v92_v59  ;;  %v155_v2 = vmul.f32 %v960_v57, %v82_v60 }
  0x88   :  { %v171_v4 = vpack.c.bf16 %v157_v1, %v156_v63  ;;  %v170_v5 = vpack.c.bf16 %v155_v2, %v154_v0 }
  0x89   :  { %v102_v6 = vpop.permute.xlu1 %101  ;;  %v97_v7 = vpop.permute.xlu0 %96 }
  0x8a   :  { %v159_v8 = vmul.f32 %v968_v61, %v102_v6  ;;  %v158_v9 = vmul.f32 %v967_v62, %v97_v7  ;;  %1044 = vmatprep.mubr.bf16.mxu0 %v170_v5  ;;  %v414_v61 = vld [vmem:[#allocation4 + $0x10] sm:$0xff]  ;;  %v413_v62 = vld [vmem:[#allocation4 + $0x8] sm:$0xff] }
  0x8b   :  { %1045 = vmatmul.mubr.bf16.vlgmr.msra.gmra.mrb[0].mxu0 %v171_v4  ;;  %v416_v4 = vld [vmem:[#allocation4 + $0x20] sm:$0xff] }
  0x8c   :  { %v172_v13 = vpack.c.bf16 %v159_v8, %v158_v9  ;;  %v417_v9 = vld [vmem:[#allocation4 + $0x28] sm:$0xff] }
  0x8d   :  { %v112_v14 = vpop.permute.xlu1 %111  ;;  %v107_v15 = vpop.permute.xlu0 %106 }
  0x8e   :  { %v161_v16 = vmul.f32 %v972_v10, %v112_v14  ;;  %v160_v17 = vmul.f32 %v971_v11, %v107_v15  ;;  %1048 = vmatprep.mubr.bf16.mxu0 %v172_v13  ;;  %v418_v11 = vld [vmem:[#allocation4 + $0x30] sm:$0xff] }
  0x90   :  { %v173_v21 = vpack.c.bf16 %v161_v16, %v160_v17  ;;  %v419_v17 = vld [vmem:[#allocation4 + $0x38] sm:$0xff] }
  0x91   :  { %v122_v22 = vpop.permute.xlu1 %121  ;;  %v117_v23 = vpop.permute.xlu0 %116 }
  0x92   :  { %v163_v24 = vmul.f32 %v976_v18, %v122_v22  ;;  %v162_v25 = vmul.f32 %v975_v19, %v117_v23  ;;  %v420_v19 = vld [vmem:[#allocation4 + $0x40] sm:$0xff] }
  0x93   :  { %1049 = vmatmul.mubr.bf16.gmra.mrb[4].mxu0 %v173_v21 }
  0x94   :  { %v174_v32 = vpack.c.bf16 %v163_v24, %v162_v25 }
  0x95   :  { %v132_v33 = vpop.permute.xlu1 %131  ;;  %v127_v35 = vpop.permute.xlu0 %126 }
  0x96   :  { %v165_v36 = vmul.f32 %v980_v27, %v132_v33  ;;  %v164_v38 = vmul.f32 %v979_v29, %v127_v35  ;;  %1052 = vmatprep.mubr.bf16.mxu0 %v174_v32  ;;  %v421_v29 = vld [vmem:[#allocation4 + $0x48] sm:$0xff]  ;;  %v422_v32 = vld [vmem:[#allocation4 + $0x50] sm:$0xff] }
  0x98   :  { %v175_v44 = vpack.c.bf16 %v165_v36, %v164_v38 }
  0x99   :  { %v142_v45 = vpop.permute.xlu1 %141  ;;  %v137_v47 = vpop.permute.xlu0 %136 }
  0x9a   :  { %v167_v48 = vmul.f32 %v984_v39, %v142_v45  ;;  %v166_v49 = vmul.f32 %v983_v41, %v137_v47 }
  0x9b   :  { %1053 = vmatmul.mubr.bf16.gmra.mrb[8].mxu0 %v175_v44  ;;  %v423_v44 = vld [vmem:[#allocation4 + $0x58] sm:$0xff] }
  0x9c   :  { %v176_v52 = vpack.c.bf16 %v167_v48, %v166_v49  ;;  %v424_v48 = vld [vmem:[#allocation4 + $0x60] sm:$0xff] }
  0x9d   :  { %v152_v53 = vpop.permute.xlu1 %151  ;;  %v147_v54 = vpop.permute.xlu0 %146 }
  0x9e   :  { %v169_v55 = vmul.f32 %v988_v50, %v152_v53  ;;  %v168_v56 = vmul.f32 %v987_v51, %v147_v54  ;;  %1056 = vmatprep.mubr.bf16.mxu0 %v176_v52 }
  0xa0   :  { %v177_v57 = vpack.c.bf16 %v169_v55, %v168_v56  ;;  %v425_v56 = vld [vmem:[#allocation4 + $0x68] sm:$0xff] }
  0xa3   :  { %1057 = vmatmul.mubr.bf16.gmra.mrb[12].mxu0 %v177_v57 }
  0xca   :  { %v445_v59 = vpop.xlane.xlu0 %444 }
  0xcb   :  { %v476_v60 = vadd.f32 %v445_v59, %v412_v58  ;;  %v426_v59 = vld [vmem:[#allocation4 + $0x70] sm:$0xff] }
  0xcd   :  { %493 = vst.msk [vmem:[#allocation4] sm:$0xff] %vm379_vm0, %v476_v60 }
  0xce   :  { %v449_v63 = vpop.xlane.xlu0 %448 }
  0xcf   :  { %v478_v0 = vadd.f32 %v449_v63, %v414_v61  ;;  %v447_v1 = vpop.xlane.xlu1 %446 }
  0xd0   :  { %v477_v2 = vadd.f32 %v447_v1, %v413_v62 }
  0xd1   :  { %495 = vst.msk [vmem:[#allocation4 + $0x10] sm:$0xff] %vm379_vm0, %v478_v0 }
  0xd2   :  { %494 = vst.msk [vmem:[#allocation4 + $0x8] sm:$0xff] %vm379_vm0, %v477_v2  ;;  %v451_v5 = vpop.xlane.xlu0 %450 }
  0xd3   :  { %v479_v6 = vadd.f32 %v451_v5, %v415_v3  ;;  %v453_v7 = vpop.xlane.xlu1 %452 }
  0xd4   :  { %v480_v8 = vadd.f32 %v453_v7, %v416_v4  ;;  %v717_v10 = vld [vmem:[#allocation4] sm:$0xff]  ;;  %v427_v4 = vld [vmem:[#allocation4 + $0x78] sm:$0xff] }
  0xd5   :  { %496 = vst.msk [vmem:[#allocation4 + $0x18] sm:$0xff] %vm379_vm0, %v479_v6  ;;  %v733_v12 = vmax.f32 %v717_v10, 1.0 }
  0xd6   :  { %497 = vst.msk [vmem:[#allocation4 + $0x20] sm:$0xff] %vm379_vm0, %v480_v8  ;;  %v455_v13 = vpop.xlane.xlu0 %454 }
  0xd7   :  { %v481_v14 = vadd.f32 %v455_v13, %v417_v9  ;;  %v457_v15 = vpop.xlane.xlu1 %456  ;;  %1119 = vrsqrt.f32 %v733_v12 }
  0xd8   :  { %v482_v16 = vadd.f32 %v457_v15, %v418_v11  ;;  %v719_v18 = vld [vmem:[#allocation4 + $0x10] sm:$0xff] }
  0xd9   :  { %498 = vst.msk [vmem:[#allocation4 + $0x28] sm:$0xff] %vm379_vm0, %v481_v14  ;;  %v735_v20 = vmax.f32 %v719_v18, 1.0  ;;  %v718_v21 = vld [vmem:[#allocation4 + $0x8] sm:$0xff] }
  0xda   :  { %499 = vst.msk [vmem:[#allocation4 + $0x30] sm:$0xff] %vm379_vm0, %v482_v16  ;;  %v459_v22 = vpop.xlane.xlu0 %458  ;;  %v734_v23 = vmax.f32 %v718_v21, 1.0 }
  0xdb   :  { %v483_v24 = vadd.f32 %v459_v22, %v419_v17  ;;  %v461_v25 = vpop.xlane.xlu1 %460  ;;  %1121 = vrsqrt.f32 %v735_v20 }
  0xdc   :  { %v484_v27 = vadd.f32 %v461_v25, %v420_v19  ;;  %1123 = vrsqrt.f32 %v734_v23  ;;  %v720_v30 = vld [vmem:[#allocation4 + $0x18] sm:$0xff] }
  0xdd   :  { %500 = vst.msk [vmem:[#allocation4 + $0x38] sm:$0xff] %vm379_vm0, %v483_v24  ;;  %v736_v33 = vmax.f32 %v720_v30, 1.0  ;;  %v721_v35 = vld [vmem:[#allocation4 + $0x20] sm:$0xff] }
  0xde   :  { %501 = vst.msk [vmem:[#allocation4 + $0x40] sm:$0xff] %vm379_vm0, %v484_v27  ;;  %v463_v36 = vpop.xlane.xlu0 %462  ;;  %v737_v38 = vmax.f32 %v721_v35, 1.0 }
  0xdf   :  { %v485_v39 = vadd.f32 %v463_v36, %v421_v29  ;;  %v465_v41 = vpop.xlane.xlu1 %464  ;;  %1125 = vrsqrt.f32 %v736_v33 }
  0xe0   :  { %v486_v42 = vadd.f32 %v465_v41, %v422_v32  ;;  %1127 = vrsqrt.f32 %v737_v38  ;;  %v722_v45 = vld [vmem:[#allocation4 + $0x28] sm:$0xff] }
  0xe1   :  { %v1120_v47 = vpop.eup %1119  ;;  %502 = vst.msk [vmem:[#allocation4 + $0x48] sm:$0xff] %vm379_vm0, %v485_v39  ;;  %v738_v49 = vmax.f32 %v722_v45, 1.0  ;;  %v723_v50 = vld [vmem:[#allocation4 + $0x30] sm:$0xff] }
  0xe2   :  { %503 = vst.msk [vmem:[#allocation4 + $0x50] sm:$0xff] %vm379_vm0, %v486_v42  ;;  %783 = vperm.xlu1 %1095, %v1120_v47   ;;  %v467_v51 = vpop.xlane.xlu0 %466  ;;  %v739_v52 = vmax.f32 %v723_v50, 1.0 }
  0xe3   :  { %v487_v53 = vadd.f32 %v467_v51, %v423_v44  ;;  %v469_v54 = vpop.xlane.xlu1 %468  ;;  %1129 = vrsqrt.f32 %v738_v49 }
  0xe4   :  { %v488_v55 = vadd.f32 %v469_v54, %v424_v48  ;;  %1131 = vrsqrt.f32 %v739_v52  ;;  %v724_v57 = vld [vmem:[#allocation4 + $0x38] sm:$0xff] }
  0xe5   :  { %v1122_v58 = vpop.eup %1121  ;;  %504 = vst.msk [vmem:[#allocation4 + $0x58] sm:$0xff] %vm379_vm0, %v487_v53  ;;  %v740_v60 = vmax.f32 %v724_v57, 1.0  ;;  %v725_v61 = vld [vmem:[#allocation4 + $0x40] sm:$0xff] }
  0xe6   :  { %v1124_v62 = vpop.eup %1123  ;;  %505 = vst.msk [vmem:[#allocation4 + $0x60] sm:$0xff] %vm379_vm0, %v488_v55  ;;  %793 = vperm.xlu1 %1095, %v1122_v58   ;;  %v471_v63 = vpop.xlane.xlu0 %470  ;;  %v741_v0 = vmax.f32 %v725_v61, 1.0 }
  0xe7   :  { %v489_v1 = vadd.f32 %v471_v63, %v425_v56  ;;  %v473_v2 = vpop.xlane.xlu1 %472  ;;  %788 = vperm.xlu0 %1094, %v1124_v62   ;;  %1133 = vrsqrt.f32 %v740_v60 }
  0xe8   :  { %v490_v3 = vadd.f32 %v473_v2, %v426_v59  ;;  %1135 = vrsqrt.f32 %v741_v0  ;;  %v726_v5 = vld [vmem:[#allocation4 + $0x48] sm:$0xff] }
  0xe9   :  { %v1126_v6 = vpop.eup %1125  ;;  %506 = vst.msk [vmem:[#allocation4 + $0x68] sm:$0xff] %vm379_vm0, %v489_v1  ;;  %v742_v7 = vmax.f32 %v726_v5, 1.0  ;;  %v727_v8 = vld [vmem:[#allocation4 + $0x50] sm:$0xff] }
  0xea   :  { %v1128_v9 = vpop.eup %1127  ;;  %507 = vst.msk [vmem:[#allocation4 + $0x70] sm:$0xff] %vm379_vm0, %v490_v3  ;;  %798 = vperm.xlu1 %1095, %v1126_v6   ;;  %v475_v10 = vpop.xlane.xlu0 %474  ;;  %v743_v11 = vmax.f32 %v727_v8, 1.0 }
  0xeb   :  { %v491_v12 = vadd.f32 %v475_v10, %v427_v4  ;;  %803 = vperm.xlu0 %1094, %v1128_v9   ;;  %1137 = vrsqrt.f32 %v742_v7 }
  0xec   :  { %1139 = vrsqrt.f32 %v743_v11  ;;  %v728_v13 = vld [vmem:[#allocation4 + $0x58] sm:$0xff] }
  0xed   :  { %v1130_v14 = vpop.eup %1129  ;;  %508 = vst.msk [vmem:[#allocation4 + $0x78] sm:$0xff] %vm379_vm0, %v491_v12  ;;  %v744_v15 = vmax.f32 %v728_v13, 1.0  ;;  %v729_v16 = vld [vmem:[#allocation4 + $0x60] sm:$0xff] }
  0xee   :  { %v1132_v17 = vpop.eup %1131  ;;  %808 = vperm.xlu1 %1095, %v1130_v14   ;;  %v745_v18 = vmax.f32 %v729_v16, 1.0 }
  0xef   :  { %813 = vperm.xlu0 %1094, %v1132_v17   ;;  %1141 = vrsqrt.f32 %v744_v15 }
  0xf0   :  { %1143 = vrsqrt.f32 %v745_v18  ;;  %v730_v19 = vld [vmem:[#allocation4 + $0x68] sm:$0xff] }
  0xf1   :  { %v1134_v20 = vpop.eup %1133  ;;  %v746_v21 = vmax.f32 %v730_v19, 1.0  ;;  %v731_v22 = vld [vmem:[#allocation4 + $0x70] sm:$0xff] }
  0xf2   :  { %v1136_v23 = vpop.eup %1135  ;;  %818 = vperm.xlu1 %1095, %v1134_v20   ;;  %v747_v24 = vmax.f32 %v731_v22, 1.0 }
  0xf3   :  { %823 = vperm.xlu0 %1094, %v1136_v23   ;;  %1145 = vrsqrt.f32 %v746_v21 }
  0xf4   :  { %1147 = vrsqrt.f32 %v747_v24  ;;  %v732_v25 = vld [vmem:[#allocation4 + $0x78] sm:$0xff] }
  0xf5   :  { %v1138_v27 = vpop.eup %1137  ;;  %v748_v29 = vmax.f32 %v732_v25, 1.0 }
  0xf6   :  { %v1140_v30 = vpop.eup %1139  ;;  %828 = vperm.xlu1 %1095, %v1138_v27  }
  0xf7   :  { %833 = vperm.xlu0 %1094, %v1140_v30   ;;  %1149 = vrsqrt.f32 %v748_v29 }
  0xf9   :  { %v1142_v32 = vpop.eup %1141 }
  0xfa   :  { %v1144_v33 = vpop.eup %1143  ;;  %838 = vperm.xlu1 %1095, %v1142_v32  }
  0xfb   :  { %843 = vperm.xlu0 %1094, %v1144_v33  }
  0xfd   :  { %v1146_v35 = vpop.eup %1145 }
  0xfe   :  { %v1148_v36 = vpop.eup %1147  ;;  %848 = vperm.xlu1 %1095, %v1146_v35  }
  0xff   :  { %853 = vperm.xlu0 %1094, %v1148_v36  }
 0x101   :  { %v1150_v38 = vpop.eup %1149 }
 0x102   :  { %858 = vperm.xlu1 %1095, %v1150_v38  }
 0x15e   :  { %v1046_v39 = vpop.f32.mrb[0].mxu0 }
 0x15f   :  { %v276_v41 = vpop.f32.mrb[1].mxu0 }
 0x160   :  { %v1047_v42 = vpop.f32.mrb[2].mxu0 }
 0x161   :  { %v340_v44 = vpack.c.bf16 %v1047_v42, %v1046_v39  ;;  %v279_v45 = vpop.f32.mrb[3].mxu0  ;;  %v784_v1 = vpop.permute.xlu1 %783 }
 0x162   :  { %v339_v47 = vpack.c.bf16 %v279_v45, %v276_v41 }
 0x164   :  { %1060 = vmatprep.subr.bf16.mxu1 %v339_v47 }
 0x165   :  { %1061 = vmatpush3.bf16.msra.mxu1 %v339_v47  ;;  %v794_v2 = vpop.permute.xlu1 %793 }
 0x166   :  { %v1050_v48 = vpop.f32.mrb[4].mxu0  ;;  %1062 = vmatprep.subr.bf16.mxu1 %v340_v44  ;;  %v789_v3 = vpop.permute.xlu0 %788 }
 0x167   :  { %v292_v49 = vpop.f32.mrb[5].mxu0 }
 0x168   :  { %v1051_v50 = vpop.f32.mrb[6].mxu0 }
 0x169   :  { %v342_v51 = vpack.c.bf16 %v1051_v50, %v1050_v48  ;;  %v295_v52 = vpop.f32.mrb[7].mxu0  ;;  %1063 = vmatpush3.bf16.msra.mxu1 %v340_v44  ;;  %v799_v4 = vpop.permute.xlu1 %798 }
 0x16a   :  { %v341_v53 = vpack.c.bf16 %v295_v52, %v292_v49  ;;  %v804_v5 = vpop.permute.xlu0 %803 }
 0x16c   :  { %1064 = vmatprep.subr.bf16.mxu1 %v341_v53 }
 0x16d   :  { %1065 = vmatpush3.bf16.msra.mxu1 %v341_v53  ;;  %v809_v6 = vpop.permute.xlu1 %808 }
 0x16e   :  { %v1054_v54 = vpop.f32.mrb[8].mxu0  ;;  %1066 = vmatprep.subr.bf16.mxu1 %v342_v51  ;;  %v814_v7 = vpop.permute.xlu0 %813 }
 0x16f   :  { %v308_v26 = vpop.f32.mrb[9].mxu0 }
 0x170   :  { %v1055_v55 = vpop.f32.mrb[10].mxu0 }
 0x171   :  { %v344_v56 = vpack.c.bf16 %v1055_v55, %v1054_v54  ;;  %v311_v57 = vpop.f32.mrb[11].mxu0  ;;  %1067 = vmatpush3.bf16.msra.mxu1 %v342_v51 }
 0x172   :  { %v343_v58 = vpack.c.bf16 %v311_v57, %v308_v26  ;;  %v824_v15 = vpop.permute.xlu0 %823 }
 0x174   :  { %1068 = vmatprep.subr.bf16.mxu1 %v343_v58 }
 0x175   :  { %1069 = vmatpush3.bf16.msra.mxu1 %v343_v58 }
 0x176   :  { %v1058_v59 = vpop.f32.mrb[12].mxu0  ;;  %1070 = vmatprep.subr.bf16.mxu1 %v344_v56  ;;  %v834_v32 = vpop.permute.xlu0 %833 }
 0x177   :  { %v324_v60 = vpop.f32.mrb[13].mxu0 }
 0x178   :  { %v1059_v61 = vpop.f32.mrb[14].mxu0 }
 0x179   :  { %v346_v62 = vpack.c.bf16 %v1059_v61, %v1058_v59  ;;  %v327_v63 = vpop.f32.mrb[15].mxu0  ;;  %1071 = vmatpush3.bf16.msra.mxu1 %v344_v56 }
 0x17a   :  { %v345_v0 = vpack.c.bf16 %v327_v63, %v324_v60  ;;  %v844_v50 = vpop.permute.xlu0 %843 }
 0x17c   :  { %1072 = vmatprep.subr.bf16.mxu1 %v345_v0 }
 0x17d   :  { %1073 = vmatpush3.bf16.msra.mxu1 %v345_v0 }
 0x17e   :  { %1074 = vmatprep.subr.bf16.mxu1 %v346_v62  ;;  %v854_v63 = vpop.permute.xlu0 %853 }
 0x181   :  { %1075 = vmatpush3.bf16.msra.mxu1 %v346_v62 }
 0x184   :  { %1077 = vmatmul.mubr.bf16.vlgmr.msra.gmra.mrb[0].mxu1 %v1280_v28 }
 0x185   :  { %1080 = vmatprep.mubr.bf16.mxu1 %v1287_v31  ;;  %v1378_v31 = vld [vmem:[%s1448_s3] ss:$0 sm:$0xff] }
 0x18c   :  { %1081 = vmatmul.mubr.bf16.gmra.mrb[4].mxu1 %v1294_v34 }
 0x18d   :  { %1084 = vmatprep.mubr.bf16.mxu1 %v1301_v37 }
 0x194   :  { %1085 = vmatmul.mubr.bf16.gmra.mrb[8].mxu1 %v1308_v40  ;;  %v819_v40 = vpop.permute.xlu1 %818 }
 0x195   :  { %1088 = vmatprep.mubr.bf16.mxu1 %v1315_v43 }
 0x198   :  { %v829_v19 = vpop.permute.xlu1 %828 }
 0x19c   :  { %1089 = vmatmul.mubr.bf16.gmra.mrb[12].mxu1 %v1322_v46  ;;  %v839_v39 = vpop.permute.xlu1 %838 }
 0x1a0   :  { %v849_v55 = vpop.permute.xlu1 %848 }
 0x257   :  { %v1078_v28 = vpop.f32.mrb[0].mxu1 }
 0x258   :  { %v863_v34 = vmul.f32 %v1078_v28, %v794_v2  ;;  %v619_v37 = vpop.f32.mrb[1].mxu1 }
 0x259   :  { %v861_v8 = vmul.f32 %v784_v1, %v619_v37  ;;  %v1079_v43 = vpop.f32.mrb[2].mxu1 }
 0x25a   :  { %v886_v46 = vadd.f32 %v1378_v31, %v863_v34  ;;  %v864_v9 = vmul.f32 %v1079_v43, %v799_v4  ;;  %v622_v10 = vpop.f32.mrb[3].mxu1  ;;  %v859_v4 = vpop.permute.xlu1 %858 }
 0x25b   :  { %v884_v11 = vadd.f32 %v1378_v31, %v861_v8  ;;  %v862_v12 = vmul.f32 %v789_v3, %v622_v10 }
 0x25c   :  { %v902_v13 = vmax.f32 %v886_v46, 0.0  ;;  %v887_v14 = vadd.f32 %v1378_v31, %v864_v9 }
 0x25d   :  { %v900_v16 = vmax.f32 %v884_v11, 0.0  ;;  %v885_v17 = vadd.f32 %v1378_v31, %v862_v12 }
 0x25e   :  { %918 = vst [vmem:[%s1449_s5 + $0x10] sm:$0xff] %v902_v13  ;;  %v903_v18 = vmax.f32 %v887_v14, 0.0 }
 0x25f   :  { %916 = vst [vmem:[%s1449_s5] sm:$0xff] %v900_v16  ;;  %v901_v20 = vmax.f32 %v885_v17, 0.0  ;;  %v1082_v21 = vpop.f32.mrb[4].mxu1 }
 0x260   :  { %919 = vst [vmem:[%s1449_s5 + $0x18] sm:$0xff] %v903_v18  ;;  %v867_v22 = vmul.f32 %v1082_v21, %v814_v7  ;;  %v635_v23 = vpop.f32.mrb[5].mxu1 }
 0x261   :  { %917 = vst [vmem:[%s1449_s5 + $0x8] sm:$0xff] %v901_v20  ;;  %v865_v24 = vmul.f32 %v804_v5, %v635_v23  ;;  %v1083_v25 = vpop.f32.mrb[6].mxu1 }
 0x262   :  { %v890_v27 = vadd.f32 %v1378_v31, %v867_v22  ;;  %v868_v29 = vmul.f32 %v1083_v25, %v819_v40  ;;  %v638_v30 = vpop.f32.mrb[7].mxu1 }
 0x263   :  { %v888_v33 = vadd.f32 %v1378_v31, %v865_v24  ;;  %v866_v35 = vmul.f32 %v809_v6, %v638_v30 }
 0x264   :  { %v906_v36 = vmax.f32 %v890_v27, 0.0  ;;  %v891_v38 = vadd.f32 %v1378_v31, %v868_v29 }
 0x265   :  { %v904_v41 = vmax.f32 %v888_v33, 0.0  ;;  %v889_v42 = vadd.f32 %v1378_v31, %v866_v35 }
 0x266   :  { %922 = vst [vmem:[%s1449_s5 + $0x30] sm:$0xff] %v906_v36  ;;  %v907_v44 = vmax.f32 %v891_v38, 0.0 }
 0x267   :  { %920 = vst [vmem:[%s1449_s5 + $0x20] sm:$0xff] %v904_v41  ;;  %v905_v45 = vmax.f32 %v889_v42, 0.0  ;;  %v1086_v47 = vpop.f32.mrb[8].mxu1 }
 0x268   :  { %923 = vst [vmem:[%s1449_s5 + $0x38] sm:$0xff] %v907_v44  ;;  %v871_v48 = vmul.f32 %v1086_v47, %v834_v32  ;;  %v651_v49 = vpop.f32.mrb[9].mxu1 }
 0x269   :  { %921 = vst [vmem:[%s1449_s5 + $0x28] sm:$0xff] %v905_v45  ;;  %v869_v51 = vmul.f32 %v824_v15, %v651_v49  ;;  %v1087_v52 = vpop.f32.mrb[10].mxu1 }
 0x26a   :  { %v894_v53 = vadd.f32 %v1378_v31, %v871_v48  ;;  %v872_v54 = vmul.f32 %v1087_v52, %v839_v39  ;;  %v654_v26 = vpop.f32.mrb[11].mxu1 }
 0x26b   :  { %v892_v56 = vadd.f32 %v1378_v31, %v869_v51  ;;  %v870_v57 = vmul.f32 %v829_v19, %v654_v26 }
 0x26c   :  { %v910_v58 = vmax.f32 %v894_v53, 0.0  ;;  %v895_v59 = vadd.f32 %v1378_v31, %v872_v54 }
 0x26d   :  { %v908_v60 = vmax.f32 %v892_v56, 0.0  ;;  %v893_v61 = vadd.f32 %v1378_v31, %v870_v57 }
 0x26e   :  { %926 = vst [vmem:[%s1449_s5 + $0x50] sm:$0xff] %v910_v58  ;;  %v911_v62 = vmax.f32 %v895_v59, 0.0 }
 0x26f   :  { %924 = vst [vmem:[%s1449_s5 + $0x40] sm:$0xff] %v908_v60  ;;  %v909_v0 = vmax.f32 %v893_v61, 0.0  ;;  %v1090_v1 = vpop.f32.mrb[12].mxu1 }
 0x270   :  { %927 = vst [vmem:[%s1449_s5 + $0x58] sm:$0xff] %v911_v62  ;;  %v875_v2 = vmul.f32 %v1090_v1, %v854_v63  ;;  %v667_v3 = vpop.f32.mrb[13].mxu1 }
 0x271   :  { %925 = vst [vmem:[%s1449_s5 + $0x48] sm:$0xff] %v909_v0  ;;  %v873_v5 = vmul.f32 %v844_v50, %v667_v3  ;;  %v1091_v6 = vpop.f32.mrb[14].mxu1 }
 0x272   :  { %v898_v7 = vadd.f32 %v1378_v31, %v875_v2  ;;  %v876_v28 = vmul.f32 %v1091_v6, %v859_v4  ;;  %v670_v34 = vpop.f32.mrb[15].mxu1 }
 0x273   :  { %v896_v37 = vadd.f32 %v1378_v31, %v873_v5  ;;  %v874_v40 = vmul.f32 %v849_v55, %v670_v34 }
 0x274   :  { %v914_v8 = vmax.f32 %v898_v7, 0.0  ;;  %v899_v43 = vadd.f32 %v1378_v31, %v876_v28 }
 0x275   :  { %v912_v46 = vmax.f32 %v896_v37, 0.0  ;;  %v897_v9 = vadd.f32 %v1378_v31, %v874_v40 }
 0x276   :  { %930 = vst [vmem:[%s1449_s5 + $0x70] sm:$0xff] %v914_v8  ;;  %v915_v10 = vmax.f32 %v899_v43, 0.0 }
 0x277   :  { %928 = vst [vmem:[%s1449_s5 + $0x60] sm:$0xff] %v912_v46  ;;  %v913_v11 = vmax.f32 %v897_v9, 0.0 }
 0x278   :  { %931 = vst [vmem:[%s1449_s5 + $0x78] sm:$0xff] %v915_v10 }
 0x279   :  { %929 = vst [vmem:[%s1449_s5 + $0x68] sm:$0xff] %v913_v11 }

</bundles_post_ra>
